<compile_context>
chip_gen: v6e
topology: v6e:2x2x1
jax: 0.10.0
libtpu: 0.0.40
codegen_flags: <defaults>
</compile_context>

<pallas_src>
import functools

import jax
import jax.numpy as jnp
from jax.experimental import pallas as pl
from jax.experimental.pallas import tpu as pltpu

F32 = jnp.float32
BF16 = jnp.bfloat16
BN_EPS = 1e-5  # PyTorch BatchNorm2d default


# ---------------------------------------------------------------------------
# Kernel 1: ConvTranspose2d(Cin, Cout, kernel=2, stride=2) as one GEMM / image.
#   out[n, co, 2i+a, 2j+b] = sum_ci x[n, ci, i, j] * W[ci, co, a, b] + bias[co]
#   computed as (4*Cout, Cin) @ (Cin, H*W)  -> pixels on the lane axis.
# ---------------------------------------------------------------------------
def _deconv_kernel(x_ref, w_ref, b_ref, o_ref):
    x = x_ref[0].astype(BF16)                                   # (Cin, P)
    o_ref[0] = jnp.dot(w_ref[...], x, preferred_element_type=F32) + b_ref[...]


def deconv2x2_stride2(x_nchw, wt, bt):
    """wt: torch ConvTranspose2d weight (Cin, Cout, 2, 2); bt: (Cout,)."""
    N, Cin, H, W = x_nchw.shape
    Cout = wt.shape[1]
    P = H * W
    xf = x_nchw.reshape(N, Cin, P)
    wT = jnp.transpose(wt, (1, 2, 3, 0)).reshape(Cout * 4, Cin).astype(BF16)
    bcol = jnp.repeat(bt, 4).reshape(Cout * 4, 1).astype(F32)   # (co,a,b) order

    up = pl.pallas_call(
        _deconv_kernel,
        grid=(N,),
        in_specs=[
            pl.BlockSpec((1, Cin, P), lambda n: (n, 0, 0)),
            pl.BlockSpec((Cout * 4, Cin), lambda n: (0, 0)),
            pl.BlockSpec((Cout * 4, 1), lambda n: (0, 0)),
        ],
        out_specs=pl.BlockSpec((1, Cout * 4, P), lambda n: (n, 0, 0)),
        out_shape=jax.ShapeDtypeStruct((N, Cout * 4, P), F32),
        compiler_params=pltpu.CompilerParams(dimension_semantics=("parallel",)),
    )(xf, wT, bcol)

    # 2x2 pixel shuffle (plain-JAX glue).
    up = up.reshape(N, Cout, 2, 2, H, W)
    return jnp.transpose(up, (0, 1, 4, 2, 5, 3)).reshape(N, Cout, 2 * H, 2 * W)
    # TODO(synk): fuse the pixel-shuffle + channel-concat into the kernel's
    # output layout (input_output_aliases) to drop this extra HBM round trip.


# ---------------------------------------------------------------------------
# Kernel 2: Conv2d 3x3 (pad=1) + bias as ONE K=9*C GEMM per image, plus
# per-channel sum / sum-of-squares accumulated across the batch grid axis
# (global training-mode BatchNorm statistics, biased variance).
# The patch matrix is built in-kernel from lane-shifted slices of the
# flattened padded image; mask zeroes the Wp-Wo wrap-around columns.
# ---------------------------------------------------------------------------
def _conv3x3_stats_kernel(xf_ref, w_ref, b_ref, mask_ref,
                          act_ref, sum_ref, sqsum_ref, *, Wp, L):
    taps = [xf_ref[0, :, pl.ds(di * Wp + dj, L)]
            for di in range(3) for dj in range(3)]
    patches = jnp.concatenate(taps, axis=0).astype(BF16)        # (9*C, L)
    acc = jnp.dot(w_ref[...], patches, preferred_element_type=F32) + b_ref[...]
    act_ref[0] = acc                                            # (Cout, L)

    @pl.when(pl.program_id(0) == 0)
    def _():
        sum_ref[...] = jnp.zeros_like(sum_ref)
        sqsum_ref[...] = jnp.zeros_like(sqsum_ref)

    masked = acc * mask_ref[...]
    sum_ref[...] += jnp.sum(masked, axis=1, keepdims=True)
    sqsum_ref[...] += jnp.sum(masked * acc, axis=1, keepdims=True)


# Kernel 3: BatchNorm apply (precomputed scale/shift) + ReLU, lane-dense.
def _bn_relu_kernel(act_ref, scale_ref, shift_ref, o_ref):
    o_ref[0] = jnp.maximum(act_ref[0] * scale_ref[...] + shift_ref[...], 0.0)


def conv3x3_bn_relu(z_nchw, w_oihw, bias, gamma, beta):
    """Fused Conv2d(3x3, pad=1) + bias + BatchNorm2d (training-mode batch
    statistics) + ReLU.  NCHW in, NCHW out."""
    N, C, Ho, Wo = z_nchw.shape
    Cout = w_oihw.shape[0]
    Hp, Wp = Ho + 2, Wo + 2
    L = Ho * Wp                    # flattened conv domain (keeps Wp-Wo junk cols)
    Lp = Hp * Wp + Wp              # flattened padded length (+Wp zero slack)

    zp = jnp.pad(z_nchw, ((0, 0), (0, 0), (1, 1), (1, 1)))
    zf = jnp.pad(zp.reshape(N, C, Hp * Wp), ((0, 0), (0, 0), (0, Wp)))

    wmat = jnp.transpose(w_oihw, (0, 2, 3, 1)).reshape(Cout, 9 * C).astype(BF16)
    bcol = bias.reshape(Cout, 1).astype(F32)
    row_mask = jnp.concatenate([jnp.ones((Wo,), F32), jnp.zeros((Wp - Wo,), F32)])
    mask = jnp.tile(row_mask, Ho).reshape(1, L)

    act, s1, s2 = pl.pallas_call(
        functools.partial(_conv3x3_stats_kernel, Wp=Wp, L=L),
        grid=(N,),
        in_specs=[
            pl.BlockSpec((1, C, Lp), lambda n: (n, 0, 0)),
            pl.BlockSpec((Cout, 9 * C), lambda n: (0, 0)),
            pl.BlockSpec((Cout, 1), lambda n: (0, 0)),
            pl.BlockSpec((1, L), lambda n: (0, 0)),
        ],
        out_specs=(
            pl.BlockSpec((1, Cout, L), lambda n: (n, 0, 0)),
            pl.BlockSpec((Cout, 1), lambda n: (0, 0)),
            pl.BlockSpec((Cout, 1), lambda n: (0, 0)),
        ),
        out_shape=(
            jax.ShapeDtypeStruct((N, Cout, L), F32),
            jax.ShapeDtypeStruct((Cout, 1), F32),
            jax.ShapeDtypeStruct((Cout, 1), F32),
        ),
        compiler_params=pltpu.CompilerParams(dimension_semantics=("arbitrary",)),
    )(zf, wmat, bcol, mask)

    # Finalize BN statistics (tiny per-channel math; var = E[x^2] - E[x]^2).
    cnt = jnp.float32(N * Ho * Wo)
    mean = s1 / cnt
    var = s2 / cnt - mean * mean
    scale = gamma.reshape(Cout, 1) * jax.lax.rsqrt(var + BN_EPS)
    shift = beta.reshape(Cout, 1) - mean * scale

    h = pl.pallas_call(
        _bn_relu_kernel,
        grid=(N,),
        in_specs=[
            pl.BlockSpec((1, Cout, L), lambda n: (n, 0, 0)),
            pl.BlockSpec((Cout, 1), lambda n: (0, 0)),
            pl.BlockSpec((Cout, 1), lambda n: (0, 0)),
        ],
        out_specs=pl.BlockSpec((1, Cout, L), lambda n: (n, 0, 0)),
        out_shape=jax.ShapeDtypeStruct((N, Cout, L), F32),
        compiler_params=pltpu.CompilerParams(dimension_semantics=("parallel",)),
    )(act, scale, shift)

    # Drop the Wp-Wo wrap-around columns, restore NCHW spatial layout.
    return h.reshape(N, Cout, Ho, Wp)[:, :, :, :Wo]
    # TODO(synk): for large H*W, tile the pixel axis with manual halo DMA
    # (memory_space=pl.ANY + pltpu.make_async_copy) instead of one image/block.


# ---------------------------------------------------------------------------
# Upsampling.forward (inputs/outputs keep PyTorch NCHW convention throughout).
# ---------------------------------------------------------------------------
def upsampling_forward(x_nchw, y_nchw, params):
    # TODO(synk): the reference module's print(x.size()) debug statements are omitted.
    up = deconv2x2_stride2(x_nchw, params["wt"], params["bt"])       # conv1
    cat = jnp.concatenate([up, y_nchw], axis=1)                      # torch.cat(dim=1)
    h = conv3x3_bn_relu(cat, params["w1"], params["b1"], params["g1"], params["beta1"])
    h = conv3x3_bn_relu(h, params["w2"], params["b2"], params["g2"], params["beta2"])
    return h


# ---------------------------------------------------------------------------
# Pure-JAX reference (mirrors the PyTorch forward; same bf16-operand / f32-acc
# matmul numerics as the kernels; training-mode BatchNorm).
# ---------------------------------------------------------------------------
def reference_forward(x, y, p):
    N, Cin, H, W = x.shape
    Cout = p["wt"].shape[1]
    up = jnp.einsum("ncij,cdab->ndiajb",
                    x.astype(BF16), p["wt"].astype(BF16),
                    preferred_element_type=F32)
    up = up.reshape(N, Cout, 2 * H, 2 * W) + p["bt"][None, :, None, None]
    cat = jnp.concatenate([up, y], axis=1)

    def block(z, w, b, g, be):
        c = jax.lax.conv_general_dilated(
            z.astype(BF16), w.astype(BF16), (1, 1), ((1, 1), (1, 1)),
            dimension_numbers=("NCHW", "OIHW", "NCHW"),
            preferred_element_type=F32,
        ) + b[None, :, None, None]
        m = jnp.mean(c, axis=(0, 2, 3), keepdims=True)
        v = jnp.mean((c - m) ** 2, axis=(0, 2, 3), keepdims=True)
        cn = (c - m) * jax.lax.rsqrt(v + BN_EPS)
        return jnp.maximum(cn * g[None, :, None, None] + be[None, :, None, None], 0.0)

    h = block(cat, p["w1"], p["b1"], p["g1"], p["beta1"])
    return block(h, p["w2"], p["b2"], p["g2"], p["beta2"])


if __name__ == "__main__":
    # Upsampling(in_channle=8, out_channle=4, y) with x:(2,8,16,16), y:(2,4,32,32)
    # so that cat(up, y) has 8 channels, matching conv2's Conv2d(in_channle, ...).
    N, Cin, Cout, H, W = 2, 8, 4, 16, 16
    key = jax.random.PRNGKey(0)
    ks = jax.random.split(key, 12)

    x = jax.random.normal(ks[0], (N, Cin, H, W), F32)
    y = jax.random.normal(ks[1], (N, Cout, 2 * H, 2 * W), F32)   # self.y skip tensor

    params = dict(
        wt=0.2 * jax.random.normal(ks[2], (Cin, Cout, 2, 2), F32),   # ConvTranspose2d
        bt=0.1 * jax.random.normal(ks[3], (Cout,), F32),
        w1=0.2 * jax.random.normal(ks[4], (Cout, Cin, 3, 3), F32),   # Conv2d(8->4)
        b1=0.1 * jax.random.normal(ks[5], (Cout,), F32),
        g1=1.0 + 0.1 * jax.random.normal(ks[6], (Cout,), F32),       # BN1 gamma/beta
        beta1=0.1 * jax.random.normal(ks[7], (Cout,), F32),
        w2=0.2 * jax.random.normal(ks[8], (Cout, Cout, 3, 3), F32),  # Conv2d(4->4)
        b2=0.1 * jax.random.normal(ks[9], (Cout,), F32),
        g2=1.0 + 0.1 * jax.random.normal(ks[10], (Cout,), F32),      # BN2 gamma/beta
        beta2=0.1 * jax.random.normal(ks[11], (Cout,), F32),
    )

    fwd = jax.jit(upsampling_forward)
    out = jax.block_until_ready(fwd(x, y, params))
    ref = jax.block_until_ready(reference_forward(x, y, params))

    assert out.shape == (N, Cout, 2 * H, 2 * W), out.shape
    assert out.dtype == F32
    err = float(jnp.max(jnp.abs(out - ref)))
    assert jnp.allclose(out, ref, atol=5e-3, rtol=5e-3), f"max abs err {err}"
    print("KERNEL_OK")
</pallas_src>

<mosaic_0001>
module attributes {stable_mosaic.version = 11 : i64} {
  func.func @_deconv_kernel(%arg0: i32, %arg1: memref<1x8x256xf32, #tpu.memory_space<vmem>>, %arg2: memref<16x8xbf16, #tpu.memory_space<vmem>>, %arg3: memref<16x1xf32, #tpu.memory_space<vmem>>, %arg4: memref<1x16x256xf32, #tpu.memory_space<vmem>>) attributes {dimension_semantics = [#tpu.dimension_semantics<parallel>], iteration_bounds = array<i64: 2>, scalar_prefetch = 0 : i64, scratch_operands = 0 : i64, tpu.core_type = #tpu.core_type<tc>, window_params = [{transform_indices = @transform_0, window_bounds = array<i64: 1, 8, 256>}, {pipeline_mode = #tpu.pipeline_mode<synchronous>, transform_indices = @transform_1, window_bounds = array<i64: 16, 8>}, {pipeline_mode = #tpu.pipeline_mode<synchronous>, transform_indices = @transform_2, window_bounds = array<i64: 16, 1>}, {transform_indices = @transform_3, window_bounds = array<i64: 1, 16, 256>}]} {
    %c0 = arith.constant 0 : index
    %c0_0 = arith.constant 0 : index
    %c0_1 = arith.constant 0 : index
    %0 = vector.load %arg1[%c0, %c0_0, %c0_1] : memref<1x8x256xf32, #tpu.memory_space<vmem>>, vector<1x8x256xf32>
    %1 = vector.shape_cast %0 : vector<1x8x256xf32> to vector<8x256xf32>
    %2 = arith.truncf %1 : vector<8x256xf32> to vector<8x256xbf16>
    %c0_2 = arith.constant 0 : index
    %c0_3 = arith.constant 0 : index
    %3 = vector.load %arg2[%c0_2, %c0_3] : memref<16x8xbf16, #tpu.memory_space<vmem>>, vector<16x8xbf16>
    %cst = arith.constant dense<0.000000e+00> : vector<16x256xf32>
    %4 = tpu.matmul %3, %2, %cst {dimension_numbers = #tpu.dot_dimension_numbers<[1], [0], [0], [1], [0, 0, 1, 1], [], []>} : vector<16x8xbf16>, vector<8x256xbf16>, vector<16x256xf32> -> vector<16x256xf32>
    %c0_4 = arith.constant 0 : index
    %c0_5 = arith.constant 0 : index
    %5 = vector.load %arg3[%c0_4, %c0_5] : memref<16x1xf32, #tpu.memory_space<vmem>>, vector<16x1xf32>
    %6 = vector.broadcast %5 : vector<16x1xf32> to vector<16x256xf32>
    %7 = arith.addf %4, %6 : vector<16x256xf32>
    %c0_6 = arith.constant 0 : index
    %c0_7 = arith.constant 0 : index
    %c0_8 = arith.constant 0 : index
    %8 = vector.load %arg4[%c0_6, %c0_7, %c0_8] : memref<1x16x256xf32, #tpu.memory_space<vmem>>, vector<1x16x256xf32>
    %9 = vector.shape_cast %8 : vector<1x16x256xf32> to vector<16x256xf32>
    %10 = vector.shape_cast %7 : vector<16x256xf32> to vector<1x16x256xf32>
    tpu.vector_store %arg4[%c0_6, %c0_7, %c0_8], %10 {strides = array<i32>} : memref<1x16x256xf32, #tpu.memory_space<vmem>>, vector<1x16x256xf32>,
    return
  }
  func.func @transform_0(%arg0: i32) -> (i32, i32, i32) {
    %c0_i32 = arith.constant 0 : i32
    %c0_i32_0 = arith.constant 0 : i32
    %c0_i32_1 = arith.constant 0 : i32
    return %arg0, %c0_i32, %c0_i32_0 : i32, i32, i32
  }
  func.func @transform_1(%arg0: i32) -> (i32, i32) {
    %c0_i32 = arith.constant 0 : i32
    %c0_i32_0 = arith.constant 0 : i32
    %c0_i32_1 = arith.constant 0 : i32
    return %c0_i32, %c0_i32_0 : i32, i32
  }
  func.func @transform_2(%arg0: i32) -> (i32, i32) {
    %c0_i32 = arith.constant 0 : i32
    %c0_i32_0 = arith.constant 0 : i32
    %c0_i32_1 = arith.constant 0 : i32
    return %c0_i32, %c0_i32_0 : i32, i32
  }
  func.func @transform_3(%arg0: i32) -> (i32, i32, i32) {
    %c0_i32 = arith.constant 0 : i32
    %c0_i32_0 = arith.constant 0 : i32
    %c0_i32_1 = arith.constant 0 : i32
    return %arg0, %c0_i32, %c0_i32_0 : i32, i32, i32
  }
}

module attributes {stable_mosaic.version = 11 : i64} {
  func.func @_conv3x3_stats_kernel(%arg0: i32, %arg1: memref<1x8x1190xf32, #tpu.memory_space<vmem>>, %arg2: memref<4x72xbf16, #tpu.memory_space<vmem>>, %arg3: memref<4x1xf32, #tpu.memory_space<vmem>>, %arg4: memref<1x1088xf32, #tpu.memory_space<vmem>>, %arg5: memref<1x4x1088xf32, #tpu.memory_space<vmem>>, %arg6: memref<4x1xf32, #tpu.memory_space<vmem>>, %arg7: memref<4x1xf32, #tpu.memory_space<vmem>>) attributes {dimension_semantics = [#tpu.dimension_semantics<arbitrary>], iteration_bounds = array<i64: 2>, scalar_prefetch = 0 : i64, scratch_operands = 0 : i64, tpu.core_type = #tpu.core_type<tc>, window_params = [{transform_indices = @transform_0, window_bounds = array<i64: 1, 8, 1190>}, {pipeline_mode = #tpu.pipeline_mode<synchronous>, transform_indices = @transform_1, window_bounds = array<i64: 4, 72>}, {pipeline_mode = #tpu.pipeline_mode<synchronous>, transform_indices = @transform_2, window_bounds = array<i64: 4, 1>}, {pipeline_mode = #tpu.pipeline_mode<synchronous>, transform_indices = @transform_3, window_bounds = array<i64: 1, 1088>}, {transform_indices = @transform_4, window_bounds = array<i64: 1, 4, 1088>}, {pipeline_mode = #tpu.pipeline_mode<synchronous>, transform_indices = @transform_5, window_bounds = array<i64: 4, 1>}, {pipeline_mode = #tpu.pipeline_mode<synchronous>, transform_indices = @transform_6, window_bounds = array<i64: 4, 1>}]} {
    %c0 = arith.constant 0 : index
    %c0_0 = arith.constant 0 : index
    %c0_1 = arith.constant 0 : index
    %0 = vector.load %arg1[%c0, %c0_0, %c0_1] : memref<1x8x1190xf32, #tpu.memory_space<vmem>>, vector<1x8x1088xf32>
    %1 = vector.shape_cast %0 : vector<1x8x1088xf32> to vector<8x1088xf32>
    %c0_2 = arith.constant 0 : index
    %c0_3 = arith.constant 0 : index
    %c1 = arith.constant 1 : index
    %2 = vector.load %arg1[%c0_2, %c0_3, %c1] : memref<1x8x1190xf32, #tpu.memory_space<vmem>>, vector<1x8x1088xf32>
    %3 = vector.shape_cast %2 : vector<1x8x1088xf32> to vector<8x1088xf32>
    %c0_4 = arith.constant 0 : index
    %c0_5 = arith.constant 0 : index
    %c2 = arith.constant 2 : index
    %4 = vector.load %arg1[%c0_4, %c0_5, %c2] : memref<1x8x1190xf32, #tpu.memory_space<vmem>>, vector<1x8x1088xf32>
    %5 = vector.shape_cast %4 : vector<1x8x1088xf32> to vector<8x1088xf32>
    %c0_6 = arith.constant 0 : index
    %c0_7 = arith.constant 0 : index
    %c34 = arith.constant 34 : index
    %6 = vector.load %arg1[%c0_6, %c0_7, %c34] : memref<1x8x1190xf32, #tpu.memory_space<vmem>>, vector<1x8x1088xf32>
    %7 = vector.shape_cast %6 : vector<1x8x1088xf32> to vector<8x1088xf32>
    %c0_8 = arith.constant 0 : index
    %c0_9 = arith.constant 0 : index
    %c35 = arith.constant 35 : index
    %8 = vector.load %arg1[%c0_8, %c0_9, %c35] : memref<1x8x1190xf32, #tpu.memory_space<vmem>>, vector<1x8x1088xf32>
    %9 = vector.shape_cast %8 : vector<1x8x1088xf32> to vector<8x1088xf32>
    %c0_10 = arith.constant 0 : index
    %c0_11 = arith.constant 0 : index
    %c36 = arith.constant 36 : index
    %10 = vector.load %arg1[%c0_10, %c0_11, %c36] : memref<1x8x1190xf32, #tpu.memory_space<vmem>>, vector<1x8x1088xf32>
    %11 = vector.shape_cast %10 : vector<1x8x1088xf32> to vector<8x1088xf32>
    %c0_12 = arith.constant 0 : index
    %c0_13 = arith.constant 0 : index
    %c68 = arith.constant 68 : index
    %12 = vector.load %arg1[%c0_12, %c0_13, %c68] : memref<1x8x1190xf32, #tpu.memory_space<vmem>>, vector<1x8x1088xf32>
    %13 = vector.shape_cast %12 : vector<1x8x1088xf32> to vector<8x1088xf32>
    %c0_14 = arith.constant 0 : index
    %c0_15 = arith.constant 0 : index
    %c69 = arith.constant 69 : index
    %14 = vector.load %arg1[%c0_14, %c0_15, %c69] : memref<1x8x1190xf32, #tpu.memory_space<vmem>>, vector<1x8x1088xf32>
    %15 = vector.shape_cast %14 : vector<1x8x1088xf32> to vector<8x1088xf32>
    %c0_16 = arith.constant 0 : index
    %c0_17 = arith.constant 0 : index
    %c70 = arith.constant 70 : index
    %16 = vector.load %arg1[%c0_16, %c0_17, %c70] : memref<1x8x1190xf32, #tpu.memory_space<vmem>>, vector<1x8x1088xf32>
    %17 = vector.shape_cast %16 : vector<1x8x1088xf32> to vector<8x1088xf32>
    %18 = tpu.concatenate %1, %3, %5, %7, %9, %11, %13, %15, %17 in 0 : vector<8x1088xf32>, vector<8x1088xf32>, vector<8x1088xf32>, vector<8x1088xf32>, vector<8x1088xf32>, vector<8x1088xf32>, vector<8x1088xf32>, vector<8x1088xf32>, vector<8x1088xf32> -> vector<72x1088xf32>
    %19 = arith.truncf %18 : vector<72x1088xf32> to vector<72x1088xbf16>
    %c0_18 = arith.constant 0 : index
    %c0_19 = arith.constant 0 : index
    %20 = vector.load %arg2[%c0_18, %c0_19] : memref<4x72xbf16, #tpu.memory_space<vmem>>, vector<4x72xbf16>
    %cst = arith.constant dense<0.000000e+00> : vector<4x1088xf32>
    %21 = tpu.matmul %20, %19, %cst {dimension_numbers = #tpu.dot_dimension_numbers<[1], [0], [0], [1], [0, 0, 1, 1], [], []>} : vector<4x72xbf16>, vector<72x1088xbf16>, vector<4x1088xf32> -> vector<4x1088xf32>
    %c0_20 = arith.constant 0 : index
    %c0_21 = arith.constant 0 : index
    %22 = vector.load %arg3[%c0_20, %c0_21] : memref<4x1xf32, #tpu.memory_space<vmem>>, vector<4x1xf32>
    %23 = vector.broadcast %22 : vector<4x1xf32> to vector<4x1088xf32>
    %24 = arith.addf %21, %23 : vector<4x1088xf32>
    %c0_22 = arith.constant 0 : index
    %c0_23 = arith.constant 0 : index
    %c0_24 = arith.constant 0 : index
    %25 = vector.load %arg5[%c0_22, %c0_23, %c0_24] : memref<1x4x1088xf32, #tpu.memory_space<vmem>>, vector<1x4x1088xf32>
    %26 = vector.shape_cast %25 : vector<1x4x1088xf32> to vector<4x1088xf32>
    %27 = vector.shape_cast %24 : vector<4x1088xf32> to vector<1x4x1088xf32>
    tpu.vector_store %arg5[%c0_22, %c0_23, %c0_24], %27 {strides = array<i32>} : memref<1x4x1088xf32, #tpu.memory_space<vmem>>, vector<1x4x1088xf32>,
    %c0_i32 = arith.constant 0 : i32
    %28 = arith.cmpi eq, %arg0, %c0_i32 : i32
    %29 = arith.extui %28 : i1 to i32
    %c0_i32_25 = arith.constant 0 : i32
    %30 = arith.cmpi ne, %29, %c0_i32_25 : i32
    scf.if %30 {
      %cst_38 = arith.constant 0.000000e+00 : f32
      %45 = vector.broadcast %cst_38 : f32 to vector<4x1xf32>
      %c0_39 = arith.constant 0 : index
      %c0_40 = arith.constant 0 : index
      %46 = vector.load %arg6[%c0_39, %c0_40] : memref<4x1xf32, #tpu.memory_space<vmem>>, vector<4x1xf32>
      tpu.vector_store %arg6[%c0_39, %c0_40], %45 {strides = array<i32>} : memref<4x1xf32, #tpu.memory_space<vmem>>, vector<4x1xf32>,
      %cst_41 = arith.constant 0.000000e+00 : f32
      %47 = vector.broadcast %cst_41 : f32 to vector<4x1xf32>
      %c0_42 = arith.constant 0 : index
      %c0_43 = arith.constant 0 : index
      %48 = vector.load %arg7[%c0_42, %c0_43] : memref<4x1xf32, #tpu.memory_space<vmem>>, vector<4x1xf32>
      tpu.vector_store %arg7[%c0_42, %c0_43], %47 {strides = array<i32>} : memref<4x1xf32, #tpu.memory_space<vmem>>, vector<4x1xf32>,
    } else {
    }
    %c0_26 = arith.constant 0 : index
    %c0_27 = arith.constant 0 : index
    %31 = vector.load %arg4[%c0_26, %c0_27] : memref<1x1088xf32, #tpu.memory_space<vmem>>, vector<1x1088xf32>
    %32 = vector.broadcast %31 : vector<1x1088xf32> to vector<4x1088xf32>
    %33 = arith.mulf %24, %32 : vector<4x1088xf32>
    %c0_28 = arith.constant 0 : index
    %c0_29 = arith.constant 0 : index
    %34 = vector.load %arg6[%c0_28, %c0_29] : memref<4x1xf32, #tpu.memory_space<vmem>>, vector<4x1xf32>
    %cst_30 = arith.constant dense<0.000000e+00> : vector<4xf32>
    %35 = vector.multi_reduction <add>, %33, %cst_30 [1] : vector<4x1088xf32> to vector<4xf32>
    %36 = vector.shape_cast %35 : vector<4xf32> to vector<4x1xf32>
    %37 = arith.addf %34, %36 : vector<4x1xf32>
    %c0_31 = arith.constant 0 : index
    %c0_32 = arith.constant 0 : index
    %38 = vector.load %arg6[%c0_31, %c0_32] : memref<4x1xf32, #tpu.memory_space<vmem>>, vector<4x1xf32>
    tpu.vector_store %arg6[%c0_31, %c0_32], %37 {strides = array<i32>} : memref<4x1xf32, #tpu.memory_space<vmem>>, vector<4x1xf32>,
    %c0_33 = arith.constant 0 : index
    %c0_34 = arith.constant 0 : index
    %39 = vector.load %arg7[%c0_33, %c0_34] : memref<4x1xf32, #tpu.memory_space<vmem>>, vector<4x1xf32>
    %40 = arith.mulf %33, %24 : vector<4x1088xf32>
    %cst_35 = arith.constant dense<0.000000e+00> : vector<4xf32>
    %41 = vector.multi_reduction <add>, %40, %cst_35 [1] : vector<4x1088xf32> to vector<4xf32>
    %42 = vector.shape_cast %41 : vector<4xf32> to vector<4x1xf32>
    %43 = arith.addf %39, %42 : vector<4x1xf32>
    %c0_36 = arith.constant 0 : index
    %c0_37 = arith.constant 0 : index
    %44 = vector.load %arg7[%c0_36, %c0_37] : memref<4x1xf32, #tpu.memory_space<vmem>>, vector<4x1xf32>
    tpu.vector_store %arg7[%c0_36, %c0_37], %43 {strides = array<i32>} : memref<4x1xf32, #tpu.memory_space<vmem>>, vector<4x1xf32>,
    return
  }
  func.func @transform_0(%arg0: i32) -> (i32, i32, i32) {
    %c0_i32 = arith.constant 0 : i32
    %c0_i32_0 = arith.constant 0 : i32
    %c0_i32_1 = arith.constant 0 : i32
    return %arg0, %c0_i32, %c0_i32_0 : i32, i32, i32
  }
  func.func @transform_1(%arg0: i32) -> (i32, i32) {
    %c0_i32 = arith.constant 0 : i32
    %c0_i32_0 = arith.constant 0 : i32
    %c0_i32_1 = arith.constant 0 : i32
    return %c0_i32, %c0_i32_0 : i32, i32
  }
  func.func @transform_2(%arg0: i32) -> (i32, i32) {
    %c0_i32 = arith.constant 0 : i32
    %c0_i32_0 = arith.constant 0 : i32
    %c0_i32_1 = arith.constant 0 : i32
    return %c0_i32, %c0_i32_0 : i32, i32
  }
  func.func @transform_3(%arg0: i32) -> (i32, i32) {
    %c0_i32 = arith.constant 0 : i32
    %c0_i32_0 = arith.constant 0 : i32
    %c0_i32_1 = arith.constant 0 : i32
    return %c0_i32, %c0_i32_0 : i32, i32
  }
  func.func @transform_4(%arg0: i32) -> (i32, i32, i32) {
    %c0_i32 = arith.constant 0 : i32
    %c0_i32_0 = arith.constant 0 : i32
    %c0_i32_1 = arith.constant 0 : i32
    return %arg0, %c0_i32, %c0_i32_0 : i32, i32, i32
  }
  func.func @transform_5(%arg0: i32) -> (i32, i32) {
    %c0_i32 = arith.constant 0 : i32
    %c0_i32_0 = arith.constant 0 : i32
    %c0_i32_1 = arith.constant 0 : i32
    return %c0_i32, %c0_i32_0 : i32, i32
  }
  func.func @transform_6(%arg0: i32) -> (i32, i32) {
    %c0_i32 = arith.constant 0 : i32
    %c0_i32_0 = arith.constant 0 : i32
    %c0_i32_1 = arith.constant 0 : i32
    return %c0_i32, %c0_i32_0 : i32, i32
  }
}

module attributes {stable_mosaic.version = 11 : i64} {
  func.func @_bn_relu_kernel(%arg0: i32, %arg1: memref<1x4x1088xf32, #tpu.memory_space<vmem>>, %arg2: memref<4x1xf32, #tpu.memory_space<vmem>>, %arg3: memref<4x1xf32, #tpu.memory_space<vmem>>, %arg4: memref<1x4x1088xf32, #tpu.memory_space<vmem>>) attributes {dimension_semantics = [#tpu.dimension_semantics<parallel>], iteration_bounds = array<i64: 2>, scalar_prefetch = 0 : i64, scratch_operands = 0 : i64, tpu.core_type = #tpu.core_type<tc>, window_params = [{transform_indices = @transform_0, window_bounds = array<i64: 1, 4, 1088>}, {pipeline_mode = #tpu.pipeline_mode<synchronous>, transform_indices = @transform_1, window_bounds = array<i64: 4, 1>}, {pipeline_mode = #tpu.pipeline_mode<synchronous>, transform_indices = @transform_2, window_bounds = array<i64: 4, 1>}, {transform_indices = @transform_3, window_bounds = array<i64: 1, 4, 1088>}]} {
    %c0 = arith.constant 0 : index
    %c0_0 = arith.constant 0 : index
    %c0_1 = arith.constant 0 : index
    %0 = vector.load %arg1[%c0, %c0_0, %c0_1] : memref<1x4x1088xf32, #tpu.memory_space<vmem>>, vector<1x4x1088xf32>
    %1 = vector.shape_cast %0 : vector<1x4x1088xf32> to vector<4x1088xf32>
    %c0_2 = arith.constant 0 : index
    %c0_3 = arith.constant 0 : index
    %2 = vector.load %arg2[%c0_2, %c0_3] : memref<4x1xf32, #tpu.memory_space<vmem>>, vector<4x1xf32>
    %3 = vector.broadcast %2 : vector<4x1xf32> to vector<4x1088xf32>
    %4 = arith.mulf %1, %3 : vector<4x1088xf32>
    %c0_4 = arith.constant 0 : index
    %c0_5 = arith.constant 0 : index
    %5 = vector.load %arg3[%c0_4, %c0_5] : memref<4x1xf32, #tpu.memory_space<vmem>>, vector<4x1xf32>
    %6 = vector.broadcast %5 : vector<4x1xf32> to vector<4x1088xf32>
    %7 = arith.addf %4, %6 : vector<4x1088xf32>
    %cst = arith.constant 0.000000e+00 : f32
    %8 = vector.broadcast %cst : f32 to vector<4x1088xf32>
    %9 = arith.maximumf %7, %8 : vector<4x1088xf32>
    %c0_6 = arith.constant 0 : index
    %c0_7 = arith.constant 0 : index
    %c0_8 = arith.constant 0 : index
    %10 = vector.load %arg4[%c0_6, %c0_7, %c0_8] : memref<1x4x1088xf32, #tpu.memory_space<vmem>>, vector<1x4x1088xf32>
    %11 = vector.shape_cast %10 : vector<1x4x1088xf32> to vector<4x1088xf32>
    %12 = vector.shape_cast %9 : vector<4x1088xf32> to vector<1x4x1088xf32>
    tpu.vector_store %arg4[%c0_6, %c0_7, %c0_8], %12 {strides = array<i32>} : memref<1x4x1088xf32, #tpu.memory_space<vmem>>, vector<1x4x1088xf32>,
    return
  }
  func.func @transform_0(%arg0: i32) -> (i32, i32, i32) {
    %c0_i32 = arith.constant 0 : i32
    %c0_i32_0 = arith.constant 0 : i32
    %c0_i32_1 = arith.constant 0 : i32
    return %arg0, %c0_i32, %c0_i32_0 : i32, i32, i32
  }
  func.func @transform_1(%arg0: i32) -> (i32, i32) {
    %c0_i32 = arith.constant 0 : i32
    %c0_i32_0 = arith.constant 0 : i32
    %c0_i32_1 = arith.constant 0 : i32
    return %c0_i32, %c0_i32_0 : i32, i32
  }
  func.func @transform_2(%arg0: i32) -> (i32, i32) {
    %c0_i32 = arith.constant 0 : i32
    %c0_i32_0 = arith.constant 0 : i32
    %c0_i32_1 = arith.constant 0 : i32
    return %c0_i32, %c0_i32_0 : i32, i32
  }
  func.func @transform_3(%arg0: i32) -> (i32, i32, i32) {
    %c0_i32 = arith.constant 0 : i32
    %c0_i32_0 = arith.constant 0 : i32
    %c0_i32_1 = arith.constant 0 : i32
    return %arg0, %c0_i32, %c0_i32_0 : i32, i32, i32
  }
}

module attributes {stable_mosaic.version = 11 : i64} {
  func.func @_conv3x3_stats_kernel(%arg0: i32, %arg1: memref<1x4x1190xf32, #tpu.memory_space<vmem>>, %arg2: memref<4x36xbf16, #tpu.memory_space<vmem>>, %arg3: memref<4x1xf32, #tpu.memory_space<vmem>>, %arg4: memref<1x1088xf32, #tpu.memory_space<vmem>>, %arg5: memref<1x4x1088xf32, #tpu.memory_space<vmem>>, %arg6: memref<4x1xf32, #tpu.memory_space<vmem>>, %arg7: memref<4x1xf32, #tpu.memory_space<vmem>>) attributes {dimension_semantics = [#tpu.dimension_semantics<arbitrary>], iteration_bounds = array<i64: 2>, scalar_prefetch = 0 : i64, scratch_operands = 0 : i64, tpu.core_type = #tpu.core_type<tc>, window_params = [{transform_indices = @transform_0, window_bounds = array<i64: 1, 4, 1190>}, {pipeline_mode = #tpu.pipeline_mode<synchronous>, transform_indices = @transform_1, window_bounds = array<i64: 4, 36>}, {pipeline_mode = #tpu.pipeline_mode<synchronous>, transform_indices = @transform_2, window_bounds = array<i64: 4, 1>}, {pipeline_mode = #tpu.pipeline_mode<synchronous>, transform_indices = @transform_3, window_bounds = array<i64: 1, 1088>}, {transform_indices = @transform_4, window_bounds = array<i64: 1, 4, 1088>}, {pipeline_mode = #tpu.pipeline_mode<synchronous>, transform_indices = @transform_5, window_bounds = array<i64: 4, 1>}, {pipeline_mode = #tpu.pipeline_mode<synchronous>, transform_indices = @transform_6, window_bounds = array<i64: 4, 1>}]} {
    %c0 = arith.constant 0 : index
    %c0_0 = arith.constant 0 : index
    %c0_1 = arith.constant 0 : index
    %0 = vector.load %arg1[%c0, %c0_0, %c0_1] : memref<1x4x1190xf32, #tpu.memory_space<vmem>>, vector<1x4x1088xf32>
    %1 = vector.shape_cast %0 : vector<1x4x1088xf32> to vector<4x1088xf32>
    %c0_2 = arith.constant 0 : index
    %c0_3 = arith.constant 0 : index
    %c1 = arith.constant 1 : index
    %2 = vector.load %arg1[%c0_2, %c0_3, %c1] : memref<1x4x1190xf32, #tpu.memory_space<vmem>>, vector<1x4x1088xf32>
    %3 = vector.shape_cast %2 : vector<1x4x1088xf32> to vector<4x1088xf32>
    %c0_4 = arith.constant 0 : index
    %c0_5 = arith.constant 0 : index
    %c2 = arith.constant 2 : index
    %4 = vector.load %arg1[%c0_4, %c0_5, %c2] : memref<1x4x1190xf32, #tpu.memory_space<vmem>>, vector<1x4x1088xf32>
    %5 = vector.shape_cast %4 : vector<1x4x1088xf32> to vector<4x1088xf32>
    %c0_6 = arith.constant 0 : index
    %c0_7 = arith.constant 0 : index
    %c34 = arith.constant 34 : index
    %6 = vector.load %arg1[%c0_6, %c0_7, %c34] : memref<1x4x1190xf32, #tpu.memory_space<vmem>>, vector<1x4x1088xf32>
    %7 = vector.shape_cast %6 : vector<1x4x1088xf32> to vector<4x1088xf32>
    %c0_8 = arith.constant 0 : index
    %c0_9 = arith.constant 0 : index
    %c35 = arith.constant 35 : index
    %8 = vector.load %arg1[%c0_8, %c0_9, %c35] : memref<1x4x1190xf32, #tpu.memory_space<vmem>>, vector<1x4x1088xf32>
    %9 = vector.shape_cast %8 : vector<1x4x1088xf32> to vector<4x1088xf32>
    %c0_10 = arith.constant 0 : index
    %c0_11 = arith.constant 0 : index
    %c36 = arith.constant 36 : index
    %10 = vector.load %arg1[%c0_10, %c0_11, %c36] : memref<1x4x1190xf32, #tpu.memory_space<vmem>>, vector<1x4x1088xf32>
    %11 = vector.shape_cast %10 : vector<1x4x1088xf32> to vector<4x1088xf32>
    %c0_12 = arith.constant 0 : index
    %c0_13 = arith.constant 0 : index
    %c68 = arith.constant 68 : index
    %12 = vector.load %arg1[%c0_12, %c0_13, %c68] : memref<1x4x1190xf32, #tpu.memory_space<vmem>>, vector<1x4x1088xf32>
    %13 = vector.shape_cast %12 : vector<1x4x1088xf32> to vector<4x1088xf32>
    %c0_14 = arith.constant 0 : index
    %c0_15 = arith.constant 0 : index
    %c69 = arith.constant 69 : index
    %14 = vector.load %arg1[%c0_14, %c0_15, %c69] : memref<1x4x1190xf32, #tpu.memory_space<vmem>>, vector<1x4x1088xf32>
    %15 = vector.shape_cast %14 : vector<1x4x1088xf32> to vector<4x1088xf32>
    %c0_16 = arith.constant 0 : index
    %c0_17 = arith.constant 0 : index
    %c70 = arith.constant 70 : index
    %16 = vector.load %arg1[%c0_16, %c0_17, %c70] : memref<1x4x1190xf32, #tpu.memory_space<vmem>>, vector<1x4x1088xf32>
    %17 = vector.shape_cast %16 : vector<1x4x1088xf32> to vector<4x1088xf32>
    %18 = tpu.concatenate %1, %3, %5, %7, %9, %11, %13, %15, %17 in 0 : vector<4x1088xf32>, vector<4x1088xf32>, vector<4x1088xf32>, vector<4x1088xf32>, vector<4x1088xf32>, vector<4x1088xf32>, vector<4x1088xf32>, vector<4x1088xf32>, vector<4x1088xf32> -> vector<36x1088xf32>
    %19 = arith.truncf %18 : vector<36x1088xf32> to vector<36x1088xbf16>
    %c0_18 = arith.constant 0 : index
    %c0_19 = arith.constant 0 : index
    %20 = vector.load %arg2[%c0_18, %c0_19] : memref<4x36xbf16, #tpu.memory_space<vmem>>, vector<4x36xbf16>
    %cst = arith.constant dense<0.000000e+00> : vector<4x1088xf32>
    %21 = tpu.matmul %20, %19, %cst {dimension_numbers = #tpu.dot_dimension_numbers<[1], [0], [0], [1], [0, 0, 1, 1], [], []>} : vector<4x36xbf16>, vector<36x1088xbf16>, vector<4x1088xf32> -> vector<4x1088xf32>
    %c0_20 = arith.constant 0 : index
    %c0_21 = arith.constant 0 : index
    %22 = vector.load %arg3[%c0_20, %c0_21] : memref<4x1xf32, #tpu.memory_space<vmem>>, vector<4x1xf32>
    %23 = vector.broadcast %22 : vector<4x1xf32> to vector<4x1088xf32>
    %24 = arith.addf %21, %23 : vector<4x1088xf32>
    %c0_22 = arith.constant 0 : index
    %c0_23 = arith.constant 0 : index
    %c0_24 = arith.constant 0 : index
    %25 = vector.load %arg5[%c0_22, %c0_23, %c0_24] : memref<1x4x1088xf32, #tpu.memory_space<vmem>>, vector<1x4x1088xf32>
    %26 = vector.shape_cast %25 : vector<1x4x1088xf32> to vector<4x1088xf32>
    %27 = vector.shape_cast %24 : vector<4x1088xf32> to vector<1x4x1088xf32>
    tpu.vector_store %arg5[%c0_22, %c0_23, %c0_24], %27 {strides = array<i32>} : memref<1x4x1088xf32, #tpu.memory_space<vmem>>, vector<1x4x1088xf32>,
    %c0_i32 = arith.constant 0 : i32
    %28 = arith.cmpi eq, %arg0, %c0_i32 : i32
    %29 = arith.extui %28 : i1 to i32
    %c0_i32_25 = arith.constant 0 : i32
    %30 = arith.cmpi ne, %29, %c0_i32_25 : i32
    scf.if %30 {
      %cst_38 = arith.constant 0.000000e+00 : f32
      %45 = vector.broadcast %cst_38 : f32 to vector<4x1xf32>
      %c0_39 = arith.constant 0 : index
      %c0_40 = arith.constant 0 : index
      %46 = vector.load %arg6[%c0_39, %c0_40] : memref<4x1xf32, #tpu.memory_space<vmem>>, vector<4x1xf32>
      tpu.vector_store %arg6[%c0_39, %c0_40], %45 {strides = array<i32>} : memref<4x1xf32, #tpu.memory_space<vmem>>, vector<4x1xf32>,
      %cst_41 = arith.constant 0.000000e+00 : f32
      %47 = vector.broadcast %cst_41 : f32 to vector<4x1xf32>
      %c0_42 = arith.constant 0 : index
      %c0_43 = arith.constant 0 : index
      %48 = vector.load %arg7[%c0_42, %c0_43] : memref<4x1xf32, #tpu.memory_space<vmem>>, vector<4x1xf32>
      tpu.vector_store %arg7[%c0_42, %c0_43], %47 {strides = array<i32>} : memref<4x1xf32, #tpu.memory_space<vmem>>, vector<4x1xf32>,
    } else {
    }
    %c0_26 = arith.constant 0 : index
    %c0_27 = arith.constant 0 : index
    %31 = vector.load %arg4[%c0_26, %c0_27] : memref<1x1088xf32, #tpu.memory_space<vmem>>, vector<1x1088xf32>
    %32 = vector.broadcast %31 : vector<1x1088xf32> to vector<4x1088xf32>
    %33 = arith.mulf %24, %32 : vector<4x1088xf32>
    %c0_28 = arith.constant 0 : index
    %c0_29 = arith.constant 0 : index
    %34 = vector.load %arg6[%c0_28, %c0_29] : memref<4x1xf32, #tpu.memory_space<vmem>>, vector<4x1xf32>
    %cst_30 = arith.constant dense<0.000000e+00> : vector<4xf32>
    %35 = vector.multi_reduction <add>, %33, %cst_30 [1] : vector<4x1088xf32> to vector<4xf32>
    %36 = vector.shape_cast %35 : vector<4xf32> to vector<4x1xf32>
    %37 = arith.addf %34, %36 : vector<4x1xf32>
    %c0_31 = arith.constant 0 : index
    %c0_32 = arith.constant 0 : index
    %38 = vector.load %arg6[%c0_31, %c0_32] : memref<4x1xf32, #tpu.memory_space<vmem>>, vector<4x1xf32>
    tpu.vector_store %arg6[%c0_31, %c0_32], %37 {strides = array<i32>} : memref<4x1xf32, #tpu.memory_space<vmem>>, vector<4x1xf32>,
    %c0_33 = arith.constant 0 : index
    %c0_34 = arith.constant 0 : index
    %39 = vector.load %arg7[%c0_33, %c0_34] : memref<4x1xf32, #tpu.memory_space<vmem>>, vector<4x1xf32>
    %40 = arith.mulf %33, %24 : vector<4x1088xf32>
    %cst_35 = arith.constant dense<0.000000e+00> : vector<4xf32>
    %41 = vector.multi_reduction <add>, %40, %cst_35 [1] : vector<4x1088xf32> to vector<4xf32>
    %42 = vector.shape_cast %41 : vector<4xf32> to vector<4x1xf32>
    %43 = arith.addf %39, %42 : vector<4x1xf32>
    %c0_36 = arith.constant 0 : index
    %c0_37 = arith.constant 0 : index
    %44 = vector.load %arg7[%c0_36, %c0_37] : memref<4x1xf32, #tpu.memory_space<vmem>>, vector<4x1xf32>
    tpu.vector_store %arg7[%c0_36, %c0_37], %43 {strides = array<i32>} : memref<4x1xf32, #tpu.memory_space<vmem>>, vector<4x1xf32>,
    return
  }
  func.func @transform_0(%arg0: i32) -> (i32, i32, i32) {
    %c0_i32 = arith.constant 0 : i32
    %c0_i32_0 = arith.constant 0 : i32
    %c0_i32_1 = arith.constant 0 : i32
    return %arg0, %c0_i32, %c0_i32_0 : i32, i32, i32
  }
  func.func @transform_1(%arg0: i32) -> (i32, i32) {
    %c0_i32 = arith.constant 0 : i32
    %c0_i32_0 = arith.constant 0 : i32
    %c0_i32_1 = arith.constant 0 : i32
    return %c0_i32, %c0_i32_0 : i32, i32
  }
  func.func @transform_2(%arg0: i32) -> (i32, i32) {
    %c0_i32 = arith.constant 0 : i32
    %c0_i32_0 = arith.constant 0 : i32
    %c0_i32_1 = arith.constant 0 : i32
    return %c0_i32, %c0_i32_0 : i32, i32
  }
  func.func @transform_3(%arg0: i32) -> (i32, i32) {
    %c0_i32 = arith.constant 0 : i32
    %c0_i32_0 = arith.constant 0 : i32
    %c0_i32_1 = arith.constant 0 : i32
    return %c0_i32, %c0_i32_0 : i32, i32
  }
  func.func @transform_4(%arg0: i32) -> (i32, i32, i32) {
    %c0_i32 = arith.constant 0 : i32
    %c0_i32_0 = arith.constant 0 : i32
    %c0_i32_1 = arith.constant 0 : i32
    return %arg0, %c0_i32, %c0_i32_0 : i32, i32, i32
  }
  func.func @transform_5(%arg0: i32) -> (i32, i32) {
    %c0_i32 = arith.constant 0 : i32
    %c0_i32_0 = arith.constant 0 : i32
    %c0_i32_1 = arith.constant 0 : i32
    return %c0_i32, %c0_i32_0 : i32, i32
  }
  func.func @transform_6(%arg0: i32) -> (i32, i32) {
    %c0_i32 = arith.constant 0 : i32
    %c0_i32_0 = arith.constant 0 : i32
    %c0_i32_1 = arith.constant 0 : i32
    return %c0_i32, %c0_i32_0 : i32, i32
  }
}

</mosaic_0001>

<bundles_post_ra>
// kernel: upsampling_forward.5
= control target key start
LH: loop header
LB: loop body
LE: loop exit
PB: predicated region body
PF: predicated region fallthrough
CT: control target
= control target key end

     0   :  { %s364_s12 = smov 0   ;;  %s390_s0 = inlined_call_operand.vmem [shape: f32[2,8,256], index: 0, kind: input, shape index: {}]   ;;  %s391_s1 = inlined_call_operand.vmem [shape: bf16[16,8], index: 1, kind: input, shape index: {}]   ;;  %s392_s2 = inlined_call_operand.vmem [shape: f32[16,1], index: 2, kind: input, shape index: {}]   ;;  %s393_s3 = inlined_call_operand.vmem [shape: f32[2,16,256], index: 3, kind: output, shape index: {}]  }
   0x1 LB: > { %s308_s13 = sadd.s32 4294967295, %s341_s12   ;;  %p312_p0 = scmp.ge.s32.totalorder %s341_s12, 1  ;;  %s341_s12 = sphi %s364_s12, %s13_s12  }
   0x2   : > { %p137_p1 = scmp.lt.s32.totalorder %s341_s12, 3 }
   0x4   : > { %p138_p2 = pnand %p312_p0, %p137_p1 }
   0x5   : > { %p161_p3 = scmp.lt.s32.totalorder (!%p138_p2), %s308_s13, 1 }
   0x6   : > { %141 = sbr.rel (%p138_p2) target bundleno = 223 (0xdf), region = 32 }
   0xb   : > { %v343_v0 = vmov 0   ;;  %v178_v1 = vld [vmem:[%s392_s2] sm:$0xff]  ;;  %s395_s13 = smov (!%p161_p3, %s308_s13), 1  ;;  %v179_v2 = vld [vmem:[%s392_s2 + $0x8] sm:$0xff]  ;;  %vm199_vm0 = vcmask 1043456   ;;  %vm195_vm1 = vcmask 64512  }
   0xc   : > { %238 = vmatprep.mubr.bf16.mxu0 %v343_v0  ;;  %333 = vset.pattern.permute.xlu0 %v343_v0  ;;  %s322_s18 = sshll.u32 %s395_s13, 4  ;;  %v334_v8 = vld [vmem:[%s391_s1] sm:$0xff]   ;;  %s323_s24 = sshll.u32 %s395_s13, 5 }
   0xd   : > { %182 = vperm.xlu0 %333, %v178_v1   ;;  %s165_s21 = scalar_lea.vmem %s390_s0, %s322_s18  ;;  %s170_s27 = scalar_lea.vmem %s393_s3, %s323_s24 }
   0xe   : > { %v173_v3 = vld [vmem:[%s165_s21 + $0x8] sm:$0xff]  ;;  %v172_v4 = vld [vmem:[%s165_s21] sm:$0xff] }
   0xf   : > { %v175_v5 = vpack.c.bf16 %v173_v3, %v173_v3  ;;  %v174_v6 = vpack.c.bf16 %v172_v4, %v172_v4 }
  0x11   : > { %187 = vperm.xlu0 %333, %v179_v2   ;;  %318 = vmatprep.subr.msk.bf16.mxu0 %vm199_vm0, %v175_v5  ;;  %v201_v7 = vsel %vm199_vm0, %v174_v6, 0 }
  0x12   : > { %221 = vmatpush1.bf16.msra.mxu0 %v201_v7 }
  0x15   : > { %319 = vmatmul.mubr.msk.bf16.vlgmr.msra.gmra.mxu0 %vm195_vm1, %v334_v8 }
  0x88   : > { %v183_v9 = vpop.permute.xlu0 %182 }
  0x8c   : > { %v188_v14 = vpop.permute.xlu0 %187 }
  0xd5   : > { %v240_v10 = vpop.f32.mrf.mxu0 }
  0xd6   : > { %v241_v11 = vadd.f32 %v240_v10, %v183_v9 }
  0xd7   : > { %v242_v12 = vpop.f32.mrf.mxu0 }
  0xd8   : > { %249 = vst [vmem:[%s170_s27] sm:$0xff] %v241_v11  ;;  %v243_v13 = vadd.f32 %v242_v12, %v183_v9 }
  0xd9   : > { %v244_v15 = vpop.f32.mrf.mxu0 }
  0xda   : > { %250 = vst [vmem:[%s170_s27 + $0x8] sm:$0xff] %v243_v13  ;;  %v245_v16 = vadd.f32 %v244_v15, %v188_v14 }
  0xdb   : > { %v246_v17 = vpop.f32.mrf.mxu0 }
  0xdc   : > { %251 = vst [vmem:[%s170_s27 + $0x10] sm:$0xff] %v245_v16  ;;  %v247_v18 = vadd.f32 %v246_v17, %v188_v14 }
  0xde   : > { %252 = vst [vmem:[%s170_s27 + $0x18] sm:$0xff] %v247_v18 }
  0xdf PF: > { %s13_s12 = sadd.s32 1, %s341_s12  }
  0xe0   : > { %p10_p4 = scmp.ge.s32.totalorder %s13_s12, 4  }
  0xe2   :  { %12 = sbr.rel (!%p10_p4) target bundleno = 1 (0x1), region = 62 }

// kernel: tile.10
= control target key start
LH: loop header
LB: loop body
LE: loop exit
PB: predicated region body
PF: predicated region fallthrough
CT: control target
= control target key end

     0   :  { %s40_s0 = inlined_call_operand.vmem [shape: f32[34], index: 0, kind: input, shape index: {}]   ;;  %s41_s1 = inlined_call_operand.vmem [shape: f32[32,34], index: 1, kind: output, shape index: {}]  }
   0x1   :  { %v4_v0 = vld [vmem:[%s40_s0] ss:$0 sm:$0xff] }
   0x2   :  { %5 = vst [vmem:[%s41_s1] sm:$0xff] %v4_v0  ;;  %12 = vst [vmem:[%s41_s1 + $0x8] sm:$0xff] %v4_v0 }
   0x3   :  { %13 = vst [vmem:[%s41_s1 + $0x10] sm:$0xff] %v4_v0  ;;  %14 = vst [vmem:[%s41_s1 + $0x18] sm:$0xff] %v4_v0 }

// kernel: tile.11
= control target key start
LH: loop header
LB: loop body
LE: loop exit
PB: predicated region body
PF: predicated region fallthrough
CT: control target
= control target key end

     0   :  { %vm9_vm0 = vcmask 15360   ;;  %vm37_vm1 = vcmask 80896   ;;  %s423_s14 = smov 126   ;;  %vm23_vm2 = vcmask 31744   ;;  %s424_s19 = smov 118   ;;  %vm51_vm3 = vcmask 97280   ;;  %s611_s0 = inlined_call_operand.vmem [shape: f32[32,34], index: 0, kind: input, shape index: {}]   ;;  %s612_s1 = inlined_call_operand.vmem [shape: f32[1,1088], index: 1, kind: output, shape index: {}]  }
   0x1   :  { %v345_v0 = vld [vmem:[%s611_s0 + $0xf] sm:$0x1]   ;;  %v349_v3 = vld [vmem:[%s611_s0 + $0xb] sm:$0x1]   ;;  %v347_v6 = vld [vmem:[%s611_s0 + $0x1e] sm:$0x1]  }
   0x2   :  { %v346_v1 = vld [vmem:[%s611_s0 + $0xf] sm:$0x1]   ;;  %v350_v4 = vld [vmem:[%s611_s0 + $0xb] sm:$0x1]   ;;  %v348_v7 = vld [vmem:[%s611_s0 + $0x1e] sm:$0x1]  }
   0x3   :  { %v10_v2 = vsel %vm9_vm0, %v346_v1, %v345_v0  ;;  %v38_v5 = vsel %vm37_vm1, %v350_v4, %v349_v3  ;;  %v24_v8 = vsel %vm23_vm2, %v348_v7, %v347_v6  ;;  %v351_v9 = vld [vmem:[%s611_s0 + $0x1a] sm:$0x1]   ;;  %v353_v12 = vld [vmem:[%s611_s0 + $0x7] sm:$0x1]   ;;  %vm65_vm4 = vcmask 146432   ;;  %s425_s3 = smov 124  }
   0x4   :  { %11 = vrot.lane.b32.xlu0 %v10_v2, %s423_s14  ;;  %39 = vrot.lane.b32.xlu1 %v38_v5, %s424_s19  ;;  %v352_v10 = vld [vmem:[%s611_s0 + $0x1a] sm:$0x1]   ;;  %v354_v13 = vld [vmem:[%s611_s0 + $0x7] sm:$0x1]   ;;  %vm79_vm5 = vcmask 162816   ;;  %s426_s4 = smov 116  }
   0x5   :  { %v52_v11 = vsel %vm51_vm3, %v352_v10, %v351_v9  ;;  %v355_v14 = vld [vmem:[%s611_s0 + $0x16] sm:$0x1]   ;;  %v66_v16 = vsel %vm65_vm4, %v354_v13, %v353_v12  ;;  %v357_v18 = vld [vmem:[%s611_s0 + $0x3] sm:$0x1]   ;;  %vm93_vm6 = vcmask 211968   ;;  %vm106_vm7 = vcmask 228352  }
   0x6   :  { %v356_v15 = vld [vmem:[%s611_s0 + $0x16] sm:$0x1]   ;;  %v358_v19 = vld [vmem:[%s611_s0 + $0x3] sm:$0x1]   ;;  %v359_v20 = vld [vmem:[%s611_s0 + $0x12] sm:$0x1]  }
   0x7   :  { %v80_v17 = vsel %vm79_vm5, %v356_v15, %v355_v14  ;;  %v360_v21 = vld [vmem:[%s611_s0 + $0x12] sm:$0x1]   ;;  %s427_s13 = smov 110   ;;  %s428_s14 = smov 108   ;;  %v94_v22 = vsel %vm93_vm6, %v358_v19, %v357_v18  ;;  %v361_v24 = vld [vmem:[%s611_s0 + $0xe] sm:$0x1]  }
   0x8   :  { %25 = vrot.lane.b32.xlu0 %v24_v8, %s425_s3  ;;  %53 = vrot.lane.b32.xlu1 %v52_v11, %s426_s4  ;;  %v107_v23 = vsel %vm106_vm7, %v360_v21, %v359_v20  ;;  %s429_s15 = smov 102   ;;  %s430_s16 = smov 100   ;;  %v362_v25 = vld [vmem:[%s611_s0 + $0x1d] sm:$0x1]   ;;  %v363_v26 = vld [vmem:[%s611_s0 + $0xa] sm:$0x1]  }
   0x9   :  { %s431_s21 = smov 92   ;;  %s432_s22 = smov 90   ;;  %v364_v27 = vld [vmem:[%s611_s0 + $0x19] sm:$0x1]   ;;  %v2_v28 = vld [vmem:[%s611_s0] sm:$0x1]  }
   0xa   :  { %s433_s29 = smov 84   ;;  %vm3_vm8 = vcmask 277504   ;;  %s434_s30 = smov 82   ;;  %v365_v29 = vld [vmem:[%s611_s0 + $0x6] sm:$0x1]   ;;  %vm13_vm9 = vcmask 261120  }
   0xb   :  { %4 = vst.msk [vmem:[#allocation0] sm:$0x1] %vm3_vm8, %v2_v28   ;;  %v366_v30 = vld [vmem:[%s611_s0 + $0x15] sm:$0x1]   ;;  %s435_s6 = smov 76   ;;  %s436_s7 = smov 74  }
   0xc   :  { %67 = vrot.lane.b32.xlu0 %v66_v16, %s427_s13  ;;  %81 = vrot.lane.b32.xlu1 %v80_v17, %s428_s14  ;;  %v367_v31 = vld [vmem:[%s611_s0 + $0x2] sm:$0x1]   ;;  %v368_v32 = vld [vmem:[%s611_s0 + $0x11] sm:$0x1]   ;;  %s437_s12 = smov 68   ;;  %s438_s13 = smov 66  }
   0xd   :  { %v369_v33 = vld [vmem:[%s611_s0 + $0xd] sm:$0x1]   ;;  %v370_v34 = vld [vmem:[%s611_s0 + $0x1c] sm:$0x1]   ;;  %s439_s18 = smov 58   ;;  %s440_s19 = smov 56  }
   0xe   :  { %v371_v35 = vld [vmem:[%s611_s0 + $0x9] sm:$0x1]   ;;  %v372_v36 = vld [vmem:[%s611_s0 + $0x18] sm:$0x1]   ;;  %s441_s24 = smov 50   ;;  %s442_s25 = smov 48  }
   0xf   :  { %v373_v37 = vld [vmem:[%s611_s0 + $0x5] sm:$0x1]   ;;  %v374_v38 = vld [vmem:[%s611_s0 + $0x14] sm:$0x1]   ;;  %s444_s2 = smov 40   ;;  %s446_s8 = smov 32  }
  0x10   :  { %95 = vrot.lane.b32.xlu0 %v94_v22, %s429_s15  ;;  %108 = vrot.lane.b32.xlu1 %v107_v23, %s430_s16  ;;  %v375_v39 = vld [vmem:[%s611_s0 + $0x1] sm:$0x1]   ;;  %v376_v40 = vld [vmem:[%s611_s0 + $0x10] sm:$0x1]   ;;  %s448_s14 = smov 24   ;;  %s450_s20 = smov 16  }
  0x11   :  { %v377_v41 = vld [vmem:[%s611_s0 + $0x1f] sm:$0x1]   ;;  %v378_v42 = vld [vmem:[%s611_s0 + $0xc] sm:$0x1]   ;;  %v379_v43 = vld [vmem:[%s611_s0 + $0x1b] sm:$0x1]  }
  0x12   :  { %v380_v44 = vld [vmem:[%s611_s0 + $0x8] sm:$0x1]   ;;  %v381_v45 = vld [vmem:[%s611_s0 + $0x17] sm:$0x1]   ;;  %v382_v46 = vld [vmem:[%s611_s0 + $0x4] sm:$0x1]  }
  0x13   :  { %s452_s26 = smov 8   ;;  %v383_v47 = vld [vmem:[%s611_s0 + $0x13] sm:$0x1]   ;;  %s453_s0 = smov 6   ;;  %vm16_vm10 = vcmask 1048560   ;;  %vm41_vm11 = vcmask 195584  }
  0x14   :  { %118 = vrot.lane.b32.xlu0 %v361_v24, %s431_s21  ;;  %125 = vrot.lane.b32.xlu1 %v362_v25, %s432_s22  ;;  %vm44_vm12 = vcmask 1048496   ;;  %vm27_vm13 = vcmask 244736   ;;  %vm30_vm14 = vcmask 1048544   ;;  %vm55_vm15 = vcmask 179200  }
  0x15   :  { %vm58_vm0 = vcmask 1048480   ;;  %vm69_vm1 = vcmask 130048   ;;  %vm72_vm2 = vcmask 1048432   ;;  %vm83_vm3 = vcmask 113664  }
  0x16   :  { %vm86_vm4 = vcmask 1048416   ;;  %vm97_vm5 = vcmask 64512   ;;  %vm100_vm6 = vcmask 1048368   ;;  %vm110_vm7 = vcmask 48128  }
  0x17   :  { %vm113_vm8 = vcmask 1048352  }
  0x18   :  { %132 = vrot.lane.b32.xlu0 %v363_v26, %s433_s29  ;;  %139 = vrot.lane.b32.xlu1 %v364_v27, %s434_s30  ;;  %s443_s30 = smov 42  }
  0x1c   :  { %146 = vrot.lane.b32.xlu0 %v365_v29, %s435_s6  ;;  %153 = vrot.lane.b32.xlu1 %v366_v30, %s436_s7  ;;  %s445_s7 = smov 34  }
  0x20   :  { %160 = vrot.lane.b32.xlu0 %v367_v31, %s437_s12  ;;  %166 = vrot.lane.b32.xlu1 %v368_v32, %s438_s13  ;;  %s447_s13 = smov 30  }
  0x24   :  { %173 = vrot.lane.b32.xlu0 %v369_v33, %s439_s18  ;;  %180 = vrot.lane.b32.xlu1 %v370_v34, %s440_s19  ;;  %s449_s19 = smov 22  }
  0x28   :  { %187 = vrot.lane.b32.xlu0 %v371_v35, %s441_s24  ;;  %194 = vrot.lane.b32.xlu1 %v372_v36, %s442_s25  ;;  %s451_s25 = smov 14  }
  0x2c   :  { %201 = vrot.lane.b32.xlu0 %v373_v37, %s443_s30  ;;  %208 = vrot.lane.b32.xlu1 %v374_v38, %s444_s2 }
  0x30   :  { %215 = vrot.lane.b32.xlu0 %v375_v39, %s445_s7  ;;  %221 = vrot.lane.b32.xlu1 %v376_v40, %s446_s8 }
  0x34   :  { %228 = vrot.lane.b32.xlu0 %v377_v41, %s447_s13  ;;  %235 = vrot.lane.b32.xlu1 %v378_v42, %s448_s14 }
  0x38   :  { %242 = vrot.lane.b32.xlu0 %v379_v43, %s449_s19  ;;  %249 = vrot.lane.b32.xlu1 %v380_v44, %s450_s20 }
  0x3c   :  { %256 = vrot.lane.b32.xlu0 %v381_v45, %s451_s25  ;;  %263 = vrot.lane.b32.xlu1 %v382_v46, %s452_s26 }
  0x40   :  { %270 = vrot.lane.b32.xlu0 %v383_v47, %s453_s0 }
  0x76   :  { %v12_v48 = vpop.permute.xlu0 %11   ;;  %v40_v49 = vpop.permute.xlu1 %39  }
  0x77   :  { %15 = vst.msk [vmem:[#allocation0 + $0x20] sm:$0x1] %vm13_vm9, %v12_v48   ;;  %vm120_vm9 = vcmask 1031904  }
  0x78   :  { %18 = vst.msk [vmem:[#allocation0 + $0x18] sm:$0x1] %vm16_vm10, %v12_v48   ;;  %vm127_vm10 = vcmask 1015504  }
  0x79   :  { %43 = vst.msk [vmem:[#allocation0 + $0x18] sm:$0x1] %vm41_vm11, %v40_v49   ;;  %vm134_vm11 = vcmask 966304  }
  0x7a   :  { %46 = vst.msk [vmem:[#allocation0 + $0x10] sm:$0x1] %vm44_vm12, %v40_v49   ;;  %v26_v50 = vpop.permute.xlu0 %25   ;;  %v54_v51 = vpop.permute.xlu1 %53   ;;  %vm141_vm12 = vcmask 949904  }
  0x7b   :  { %29 = vst.msk [vmem:[#allocation0 + $0x40] sm:$0x1] %vm27_vm13, %v26_v50   ;;  %vm148_vm13 = vcmask 900704  }
  0x7c   :  { %32 = vst.msk [vmem:[#allocation0 + $0x38] sm:$0x1] %vm30_vm14, %v26_v50   ;;  %vm155_vm14 = vcmask 884304  }
  0x7d   :  { %57 = vst.msk [vmem:[#allocation0 + $0x38] sm:$0x1] %vm55_vm15, %v54_v51   ;;  %vm162_vm15 = vcmask 835104  }
  0x7e   :  { %60 = vst.msk [vmem:[#allocation0 + $0x30] sm:$0x1] %vm58_vm0, %v54_v51   ;;  %v68_v52 = vpop.permute.xlu0 %67   ;;  %v82_v53 = vpop.permute.xlu1 %81   ;;  %vm168_vm0 = vcmask 818704  }
  0x7f   :  { %71 = vst.msk [vmem:[#allocation0 + $0x10] sm:$0x1] %vm69_vm1, %v68_v52   ;;  %vm175_vm1 = vcmask 753104  }
  0x80   :  { %74 = vst.msk [vmem:[#allocation0 + $0x8] sm:$0x1] %vm72_vm2, %v68_v52   ;;  %vm182_vm2 = vcmask 736704  }
  0x81   :  { %85 = vst.msk [vmem:[#allocation0 + $0x30] sm:$0x1] %vm83_vm3, %v82_v53   ;;  %vm189_vm3 = vcmask 687504  }
  0x82   :  { %88 = vst.msk [vmem:[#allocation0 + $0x28] sm:$0x1] %vm86_vm4, %v82_v53   ;;  %v96_v54 = vpop.permute.xlu0 %95   ;;  %v109_v55 = vpop.permute.xlu1 %108   ;;  %vm196_vm4 = vcmask 671104  }
  0x83   :  { %99 = vst.msk [vmem:[#allocation0 + $0x8] sm:$0x1] %vm97_vm5, %v96_v54   ;;  %vm203_vm5 = vcmask 621904  }
  0x84   :  { %101 = vst.msk [vmem:[#allocation0] sm:$0x1] %vm100_vm6, %v96_v54   ;;  %vm210_vm6 = vcmask 605504  }
  0x85   :  { %112 = vst.msk [vmem:[#allocation0 + $0x28] sm:$0x1] %vm110_vm7, %v109_v55   ;;  %vm217_vm7 = vcmask 556304  }
  0x86   :  { %115 = vst.msk [vmem:[#allocation0 + $0x20] sm:$0x1] %vm113_vm8, %v109_v55   ;;  %v119_v56 = vpop.permute.xlu0 %118   ;;  %v126_v57 = vpop.permute.xlu1 %125   ;;  %vm223_vm8 = vcmask 539904  }
  0x87   :  { %122 = vst.msk [vmem:[#allocation0 + $0x18] sm:$0x1] %vm120_vm9, %v119_v56   ;;  %vm230_vm9 = vcmask 523504  }
  0x88   :  { %129 = vst.msk [vmem:[#allocation0 + $0x38] sm:$0x1] %vm127_vm10, %v126_v57   ;;  %vm237_vm10 = vcmask 474304  }
  0x8a   :  { %v133_v58 = vpop.permute.xlu0 %132   ;;  %v140_v59 = vpop.permute.xlu1 %139  }
  0x8b   :  { %136 = vst.msk [vmem:[#allocation0 + $0x10] sm:$0x1] %vm134_vm11, %v133_v58   ;;  %vm244_vm11 = vcmask 457904  }
  0x8c   :  { %143 = vst.msk [vmem:[#allocation0 + $0x30] sm:$0x1] %vm141_vm12, %v140_v59   ;;  %vm251_vm12 = vcmask 408704  }
  0x8e   :  { %v147_v60 = vpop.permute.xlu0 %146   ;;  %v154_v61 = vpop.permute.xlu1 %153  }
  0x8f   :  { %150 = vst.msk [vmem:[#allocation0 + $0x8] sm:$0x1] %vm148_vm13, %v147_v60   ;;  %vm258_vm13 = vcmask 392304  }
  0x90   :  { %157 = vst.msk [vmem:[#allocation0 + $0x28] sm:$0x1] %vm155_vm14, %v154_v61   ;;  %vm265_vm14 = vcmask 343104  }
  0x92   :  { %v161_v62 = vpop.permute.xlu0 %160   ;;  %v167_v63 = vpop.permute.xlu1 %166  }
  0x93   :  { %163 = vst.msk [vmem:[#allocation0] sm:$0x1] %vm162_vm15, %v161_v62   ;;  %vm272_vm15 = vcmask 326704  }
  0x94   :  { %170 = vst.msk [vmem:[#allocation0 + $0x20] sm:$0x1] %vm168_vm0, %v167_v63  }
  0x96   :  { %v174_v0 = vpop.permute.xlu0 %173   ;;  %v181_v1 = vpop.permute.xlu1 %180  }
  0x97   :  { %177 = vst.msk [vmem:[#allocation0 + $0x18] sm:$0x1] %vm175_vm1, %v174_v0  }
  0x98   :  { %184 = vst.msk [vmem:[#allocation0 + $0x38] sm:$0x1] %vm182_vm2, %v181_v1  }
  0x9a   :  { %v188_v2 = vpop.permute.xlu0 %187   ;;  %v195_v3 = vpop.permute.xlu1 %194  }
  0x9b   :  { %191 = vst.msk [vmem:[#allocation0 + $0x10] sm:$0x1] %vm189_vm3, %v188_v2  }
  0x9c   :  { %198 = vst.msk [vmem:[#allocation0 + $0x30] sm:$0x1] %vm196_vm4, %v195_v3  }
  0x9e   :  { %v202_v4 = vpop.permute.xlu0 %201   ;;  %v209_v5 = vpop.permute.xlu1 %208  }
  0x9f   :  { %205 = vst.msk [vmem:[#allocation0 + $0x8] sm:$0x1] %vm203_vm5, %v202_v4  }
  0xa0   :  { %212 = vst.msk [vmem:[#allocation0 + $0x28] sm:$0x1] %vm210_vm6, %v209_v5  }
  0xa2   :  { %v216_v6 = vpop.permute.xlu0 %215   ;;  %v222_v7 = vpop.permute.xlu1 %221  }
  0xa3   :  { %218 = vst.msk [vmem:[#allocation0] sm:$0x1] %vm217_vm7, %v216_v6  }
  0xa4   :  { %225 = vst.msk [vmem:[#allocation0 + $0x20] sm:$0x1] %vm223_vm8, %v222_v7  }
  0xa6   :  { %v229_v8 = vpop.permute.xlu0 %228   ;;  %v236_v9 = vpop.permute.xlu1 %235  }
  0xa7   :  { %232 = vst.msk [vmem:[#allocation0 + $0x40] sm:$0x1] %vm230_vm9, %v229_v8  }
  0xa8   :  { %239 = vst.msk [vmem:[#allocation0 + $0x18] sm:$0x1] %vm237_vm10, %v236_v9  }
  0xaa   :  { %v279_v10 = vld [vmem:[#allocation0] sm:$0x1]  ;;  %v243_v11 = vpop.permute.xlu0 %242   ;;  %v250_v13 = vpop.permute.xlu1 %249  }
  0xab   :  { %282 = vst [vmem:[%s612_s1] sm:$0x1] %v279_v10  ;;  %v304_v12 = vld [vmem:[#allocation0 + $0x20] sm:$0x1]  ;;  %246 = vst.msk [vmem:[#allocation0 + $0x38] sm:$0x1] %vm244_vm11, %v243_v11  }
  0xac   :  { %387 = vst [vmem:[%s612_s1 + $0x4] sm:$0x1] %v304_v12  ;;  %253 = vst.msk [vmem:[#allocation0 + $0x10] sm:$0x1] %vm251_vm12, %v250_v13  }
  0xae   :  { %v332_v14 = vld [vmem:[#allocation0 + $0x40] sm:$0x1]  ;;  %v257_v15 = vpop.permute.xlu0 %256   ;;  %v264_v17 = vpop.permute.xlu1 %263  }
  0xaf   :  { %391 = vst [vmem:[%s612_s1 + $0x8] sm:$0x1] %v332_v14  ;;  %v297_v16 = vld [vmem:[#allocation0 + $0x18] sm:$0x1]  ;;  %260 = vst.msk [vmem:[#allocation0 + $0x30] sm:$0x1] %vm258_vm13, %v257_v15  }
  0xb0   :  { %386 = vst [vmem:[%s612_s1 + $0x3] sm:$0x1] %v297_v16  ;;  %267 = vst.msk [vmem:[#allocation0 + $0x8] sm:$0x1] %vm265_vm14, %v264_v17  }
  0xb2   :  { %v325_v18 = vld [vmem:[#allocation0 + $0x38] sm:$0x1]  ;;  %v271_v19 = vpop.permute.xlu0 %270  }
  0xb3   :  { %390 = vst [vmem:[%s612_s1 + $0x7] sm:$0x1] %v325_v18  ;;  %v290_v20 = vld [vmem:[#allocation0 + $0x10] sm:$0x1]  ;;  %274 = vst.msk [vmem:[#allocation0 + $0x28] sm:$0x1] %vm272_vm15, %v271_v19  }
  0xb4   :  { %385 = vst [vmem:[%s612_s1 + $0x2] sm:$0x1] %v290_v20 }
  0xb6   :  { %v318_v21 = vld [vmem:[#allocation0 + $0x30] sm:$0x1] }
  0xb7   :  { %389 = vst [vmem:[%s612_s1 + $0x6] sm:$0x1] %v318_v21  ;;  %v284_v22 = vld [vmem:[#allocation0 + $0x8] sm:$0x1] }
  0xb8   :  { %384 = vst [vmem:[%s612_s1 + $0x1] sm:$0x1] %v284_v22 }
  0xba   :  { %v311_v23 = vld [vmem:[#allocation0 + $0x28] sm:$0x1] }
  0xbb   :  { %388 = vst [vmem:[%s612_s1 + $0x5] sm:$0x1] %v311_v23 }

// kernel: upsampling_forward.7
= control target key start
LH: loop header
LB: loop body
LE: loop exit
PB: predicated region body
PF: predicated region fallthrough
CT: control target
= control target key end

     0   :  { %s329_s12 = smov 0   ;;  %s352_s0 = inlined_call_operand.vmem [shape: f32[2,4,1088], index: 0, kind: input, shape index: {}]   ;;  %s353_s1 = inlined_call_operand.vmem [shape: f32[4,1], index: 1, kind: input, shape index: {}]   ;;  %s354_s2 = inlined_call_operand.vmem [shape: f32[4,1], index: 2, kind: input, shape index: {}]   ;;  %s355_s3 = inlined_call_operand.vmem [shape: f32[2,4,1088], index: 3, kind: output, shape index: {}]  }
   0x1 LB: > { %s278_s13 = sadd.s32 4294967295, %s305_s12   ;;  %p282_p0 = scmp.ge.s32.totalorder %s305_s12, 1  ;;  %s305_s12 = sphi %s329_s12, %s13_s12  }
   0x2   : > { %p137_p1 = scmp.lt.s32.totalorder %s305_s12, 3 }
   0x4   : > { %p138_p2 = pnand %p282_p0, %p137_p1 }
   0x5   : > { %p161_p3 = scmp.lt.s32.totalorder (!%p138_p2), %s278_s13, 1 }
   0x6   : > { %141 = sbr.rel (%p138_p2) target bundleno = 150 (0x96), region = 32 }
   0xb   : > { %v176_v0 = vld [vmem:[%s353_s1] sm:$0xf]  ;;  %v307_v1 = vmov 0   ;;  %v308_v3 = vmov 839922192   ;;  %v184_v5 = vlaneseq  ;;  %s357_s13 = smov (!%p161_p3, %s278_s13), 1 }
   0xc   : > { %298 = vset.pattern.permute.xlu0 %v307_v1  ;;  %v194_v2 = vld [vmem:[%s354_s2] sm:$0xf]  ;;  %v182_v4 = vunpack.c.l.s4 %v308_v3  ;;  %s287_s18 = smul.u32 36, %s357_s13  ;;  %vm221_vm0 = vcmask 519168  }
   0xd   : > { %179 = vperm.xlu0 %298, %v176_v0   ;;  %v185_v7 = vshrl.u32 %v184_v5, 7 }
   0xe   : > { %v183_v6 = vunpack.c.0.s8 %v182_v4  ;;  %s165_s21 = scalar_lea.vmem %s352_s0, %s287_s18  ;;  %s170_s24 = scalar_lea.vmem %s355_s3, %s287_s18 }
   0xf   : > { %v171_v10 = vld [vmem:[%s165_s21] sm:$0xff]  ;;  %v172_v12 = vld [vmem:[%s165_s21 + $0x8] sm:$0xff]  ;;  %v173_v13 = vld [vmem:[%s165_s21 + $0x10] sm:$0xff] }
  0x10   : > { %v186_v8 = vsub.s32 %v183_v6, %v185_v7  ;;  %v174_v14 = vld [vmem:[%s165_s21 + $0x18] sm:$0xff]  ;;  %v175_v15 = vld [vmem:[%s165_s21 + $0x20] sm:$0xf] }
  0x11   : > { %197 = vperm.xlu0 %298, %v194_v2  }
  0x88   : > { %v180_v9 = vpop.permute.xlu0 %179 }
  0x89   : > { %v187_v11 = vrot.slane %v180_v9, %v186_v8 }
  0x8b   : > { %v189_v16 = vmul.f32 %v187_v11, %v171_v10  ;;  %v190_v18 = vmul.f32 %v187_v11, %v172_v12  ;;  %v191_v19 = vmul.f32 %v187_v11, %v173_v13  ;;  %v192_v20 = vmul.f32 %v187_v11, %v174_v14 }
  0x8c   : > { %v198_v17 = vpop.permute.xlu0 %197  ;;  %v193_v22 = vmul.f32 %v187_v11, %v175_v15 }
  0x8d   : > { %v205_v21 = vrot.slane %v198_v17, %v186_v8 }
  0x8f   : > { %v207_v23 = vadd.f32 %v205_v21, %v189_v16  ;;  %v208_v24 = vadd.f32 %v205_v21, %v190_v18  ;;  %v209_v25 = vadd.f32 %v205_v21, %v191_v19  ;;  %v210_v26 = vadd.f32 %v205_v21, %v192_v20 }
  0x90   : > { %v211_v27 = vadd.f32 %v205_v21, %v193_v22 }
  0x91   : > { %v212_v28 = vmax.f32 %v207_v23, 0.0  ;;  %v213_v29 = vmax.f32 %v208_v24, 0.0  ;;  %v214_v30 = vmax.f32 %v209_v25, 0.0  ;;  %v215_v31 = vmax.f32 %v210_v26, 0.0 }
  0x92   : > { %v216_v32 = vmax.f32 %v211_v27, 0.0 }
  0x93   : > { %217 = vst [vmem:[%s170_s24] sm:$0xff] %v212_v28  ;;  %218 = vst [vmem:[%s170_s24 + $0x8] sm:$0xff] %v213_v29 }
  0x94   : > { %219 = vst [vmem:[%s170_s24 + $0x10] sm:$0xff] %v214_v30  ;;  %220 = vst [vmem:[%s170_s24 + $0x18] sm:$0xff] %v215_v31 }
  0x95   : > { %222 = vst.msk [vmem:[%s170_s24 + $0x20] sm:$0xf] %vm221_vm0, %v216_v32 }
  0x96 PF: > { %s13_s12 = sadd.s32 1, %s305_s12  }
  0x97   : > { %p10_p4 = scmp.ge.s32.totalorder %s13_s12, 4  }
  0x99   :  { %12 = sbr.rel (!%p10_p4) target bundleno = 1 (0x1), region = 62 }

// kernel: upsampling_forward.6
= control target key start
LH: loop header
LB: loop body
LE: loop exit
PB: predicated region body
PF: predicated region fallthrough
CT: control target
= control target key end

     0   :  { %s1350_s21 = smov 0   ;;  %s1810_s0 = inlined_call_operand.vmem [shape: f32[2,8,1190], index: 0, kind: input, shape index: {}]   ;;  %s1811_s1 = inlined_call_operand.vmem [shape: bf16[4,72], index: 1, kind: input, shape index: {}]   ;;  %s1812_s2 = inlined_call_operand.vmem [shape: f32[4,1], index: 2, kind: input, shape index: {}]   ;;  %s1813_s3 = inlined_call_operand.vmem [shape: f32[1,1088], index: 3, kind: input, shape index: {}]   ;;  %s1814_s4 = inlined_call_operand.vmem [shape: f32[2,4,1088], index: 4, kind: output, shape index: {0}]   ;;  %s1815_s5 = inlined_call_operand.vmem [shape: f32[4,1], index: 5, kind: output, shape index: {1}]   ;;  %s1816_s6 = inlined_call_operand.vmem [shape: f32[4,1], index: 6, kind: output, shape index: {2}]  }
   0x1 LB: > { %s1356_s22 = sadd.s32 4294967295, %s1301_s21   ;;  %p1065_p0 = scmp.ge.s32.totalorder %s1301_s21, 1  ;;  %s1301_s21 = sphi %s1350_s21, %s17_s21  }
   0x2   : > { %p207_p1 = scmp.lt.s32.totalorder %s1301_s21, 3 }
   0x4   : > { %p208_p2 = pnand %p1065_p0, %p207_p1 }
   0x5   : > { %p237_p3 = scmp.lt.s32.totalorder (!%p208_p2), %s1356_s22, 1  ;;  %s1303_s28 = smov (!%p208_p2), 60  }
   0x6   : > { %211 = sbr.rel (%p208_p2) target bundleno = 599 (0x257), region = 36  ;;  %s1304_s29 = smov (!%p208_p2), 58  }
   0x7   : > { %s1305_s30 = smov (!%p208_p2), 59   ;;  %s1306_s7 = smov (!%p208_p2), 92  }
   0x8   : > { %s1307_s8 = smov (!%p208_p2), 93   ;;  %s1308_s9 = smov (!%p208_p2), 94  }
   0x9   : > { %s1309_s10 = smov (!%p208_p2), 126   ;;  %s1311_s11 = smov (!%p208_p2), 127  }
   0xa   : > { %p1077_p4 = scmp.ne.s32.totalorder (!%p208_p2), %s1356_s22, 0 }
   0xb   : > { %s1362_s23 = scalar_select %p237_p3, %s1356_s22, 1  ;;  %v1310_v12 = vmov 0   ;;  %v611_v19 = vld [vmem:[%s1812_s2] sm:$0xf]  ;;  %vm546_vm0 = vcmask 474112   ;;  %vm507_vm1 = vcmask 482304  }
   0xc   : > { %681 = vmatprep.mubr.bf16.mxu0 %v1310_v12  ;;  %722 = vmatprep.mubr.bf16.mxu1 %v1310_v12  ;;  %vm468_vm2 = vcmask 490496   ;;  %vm621_vm3 = vcmask 1043456   ;;  %vm393_vm4 = vcmask 760832   ;;  %vm429_vm5 = vcmask 752640  }
   0xd   : > { %s1101_s24 = smul.u32 80, %s1362_s23  ;;  %1293 = vset.pattern.permute.xlu1 %v1310_v12  ;;  %1294 = vset.pattern.permute.xlu0 %v1310_v12  ;;  %vm321_vm6 = vcmask 1031168   ;;  %vm357_vm7 = vcmask 769024   ;;  %vm285_vm8 = vcmask 1039360   ;;  %vm617_vm9 = vcmask 588800  }
   0xe   : > { %vm1313_vm10 = vmmov 0   ;;  %s1102_s16 = smul.u32 36, %s1362_s23  ;;  %vm873_vm11 = vcmask 519168  }
   0xf   : > { %s1368_s27 = scalar_lea.vmem %s1810_s0, %s1101_s24 }
  0x10   : > { %v1371_v0 = vld [vmem:[%s1368_s27 + $0x8] sm:$0xff]  ;;  %v1374_v1 = vld [vmem:[%s1368_s27 + $0x10] sm:$0xff]  ;;  %v1377_v2 = vld [vmem:[%s1368_s27] sm:$0xff]  ;;  %s1715_s19 = scalar_lea.vmem %s1814_s4, %s1102_s16 }
  0x11   : > { %v1133_v3 = vpack.i.bf16 %v1374_v1, %v1371_v0  ;;  %v1123_v4 = vpack.i.bf16 %v1371_v0, %v1377_v2  ;;  %v1384_v5 = vld [vmem:[%s1368_s27 + $0x18] sm:$0xff]  ;;  %v1405_v8 = vld [vmem:[%s1368_s27 + $0x30] sm:$0xff]  ;;  %v1411_v10 = vld [vmem:[%s1368_s27 + $0x20] sm:$0xff] }
  0x12   : > { %v1128_v6 = vpack.i.bf16 %v1384_v5, %v1374_v1  ;;  %v1148_v7 = vpack.i.bf16 %v1384_v5, %v1377_v2  ;;  %v1408_v9 = vld [vmem:[%s1368_s27 + $0x38] sm:$0xff]  ;;  %v1414_v11 = vld [vmem:[%s1368_s27 + $0x28] sm:$0xff]  ;;  %v1446_v15 = vld [vmem:[%s1368_s27 + $0x40] sm:$0xff] }
  0x13   : > { %1134 = vrot.lane.b32.xlu1 %v1133_v3, %s1303_s28  ;;  %1124 = vrot.lane.b32.xlu0 %v1123_v4, %s1304_s29  ;;  %v1208_v13 = vpack.i.bf16 %v1408_v9, %v1405_v8  ;;  %v1203_v14 = vpack.i.bf16 %v1414_v11, %v1411_v10  ;;  %v257_v16 = vld [vmem:[%s1368_s27 + $0x48] sm:$0xff]  ;;  %v1263_v18 = vpack.i.bf16 %v1446_v15, %v1408_v9 }
  0x14   : > { %v1258_v17 = vpack.i.bf16 %v257_v16, %v1446_v15 }
  0x17   : > { %1139 = vrot.lane.b32.xlu1 %v1133_v3, %s1305_s30  ;;  %1129 = vrot.lane.b32.xlu0 %v1128_v6, %s1304_s29 }
  0x1b   : > { %1149 = vrot.lane.b32.xlu1 %v1148_v7, %s1305_s30  ;;  %1144 = vrot.lane.b32.xlu0 %v1148_v7, %s1303_s28 }
  0x1f   : > { %1159 = vrot.lane.b32.xlu1 %v1133_v3, %s1306_s7  ;;  %1154 = vrot.lane.b32.xlu0 %v1133_v3, %s1307_s8 }
  0x23   : > { %1169 = vrot.lane.b32.xlu1 %v1148_v7, %s1306_s7  ;;  %1164 = vrot.lane.b32.xlu0 %v1148_v7, %s1307_s8 }
  0x27   : > { %1179 = vrot.lane.b32.xlu1 %v1133_v3, %s1308_s9  ;;  %1174 = vrot.lane.b32.xlu0 %v1133_v3, %s1309_s10 }
  0x2b   : > { %1189 = vrot.lane.b32.xlu1 %v1148_v7, %s1308_s9  ;;  %1184 = vrot.lane.b32.xlu0 %v1148_v7, %s1309_s10 }
  0x2f   : > { %1199 = vrot.lane.b32.xlu1 %v1148_v7, %s1311_s11  ;;  %1194 = vrot.lane.b32.xlu0 %v1133_v3, %s1311_s11 }
  0x33   : > { %1209 = vrot.lane.b32.xlu1 %v1208_v13, %s1304_s29  ;;  %1204 = vrot.lane.b32.xlu0 %v1203_v14, %s1304_s29 }
  0x37   : > { %1219 = vrot.lane.b32.xlu1 %v1203_v14, %s1305_s30  ;;  %1214 = vrot.lane.b32.xlu0 %v1203_v14, %s1303_s28 }
  0x3b   : > { %499 = vrot.lane.b32.xlu1 %v1405_v8, %s1305_s30  ;;  %1224 = vrot.lane.b32.xlu0 %v1208_v13, %s1303_s28 }
  0x3f   : > { %1234 = vrot.lane.b32.xlu1 %v1203_v14, %s1306_s7  ;;  %1229 = vrot.lane.b32.xlu0 %v1203_v14, %s1307_s8 }
  0x43   : > { %423 = vrot.lane.b32.xlu1 %v1405_v8, %s1306_s7  ;;  %387 = vrot.lane.b32.xlu0 %v1405_v8, %s1307_s8 }
  0x47   : > { %1244 = vrot.lane.b32.xlu1 %v1203_v14, %s1308_s9  ;;  %1239 = vrot.lane.b32.xlu0 %v1203_v14, %s1309_s10 }
  0x4b   : > { %351 = vrot.lane.b32.xlu1 %v1405_v8, %s1308_s9  ;;  %315 = vrot.lane.b32.xlu0 %v1405_v8, %s1309_s10 }
  0x4f   : > { %279 = vrot.lane.b32.xlu1 %v1405_v8, %s1311_s11  ;;  %1249 = vrot.lane.b32.xlu0 %v1203_v14, %s1311_s11 }
  0x53   : > { %1259 = vrot.lane.b32.xlu1 %v1258_v17, %s1303_s28  ;;  %1254 = vrot.lane.b32.xlu0 %v1258_v17, %s1304_s29 }
  0x57   : > { %505 = vrot.lane.b32.xlu1 %v257_v16, %s1305_s30  ;;  %1264 = vrot.lane.b32.xlu0 %v1263_v18, %s1305_s30 }
  0x5b   : > { %1274 = vrot.lane.b32.xlu1 %v1263_v18, %s1306_s7  ;;  %1269 = vrot.lane.b32.xlu0 %v1263_v18, %s1307_s8 }
  0x5f   : > { %1284 = vrot.lane.b32.xlu1 %v1263_v18, %s1308_s9  ;;  %1279 = vrot.lane.b32.xlu0 %v1263_v18, %s1309_s10 }
  0x63   : > { %1289 = vrot.lane.b32.xlu0 %v1263_v18, %s1311_s11  ;;  %614 = vperm.xlu1 %1293, %v611_v19  }
  0x85   : > { %v1467_v20 = vpop.permute.xlu1 %1134  ;;  %v1125_v21 = vpop.permute.xlu0 %1124 }
  0x86   : > { %v1127_v22 = vunpack.i.h.bf16 %v1125_v21  ;;  %v1126_v23 = vunpack.i.l.bf16 %v1125_v21  ;;  %v1137_v25 = vunpack.i.h.bf16 %v1467_v20  ;;  %v1136_v28 = vunpack.i.l.bf16 %v1467_v20 }
  0x88   : > { %v547_v24 = vsel %vm546_vm0, %v1126_v23, %v1127_v22  ;;  %v470_v40 = vsel %vm468_vm2, %v1136_v28, %v1137_v25 }
  0x89   : > { %v1471_v26 = vpop.permute.xlu1 %1139  ;;  %v1473_v27 = vpop.permute.xlu0 %1129  ;;  %v601_v32 = vpack.c.bf16 %v547_v24, %v547_v24 }
  0x8a   : > { %v1142_v29 = vunpack.i.h.bf16 %v1471_v26  ;;  %v1141_v30 = vunpack.i.l.bf16 %v1471_v26  ;;  %v1131_v31 = vunpack.i.l.bf16 %v1473_v27 }
  0x8b   : > { %v623_v41 = vsel %vm621_vm3, %v601_v32, 0 }
  0x8c   : > { %v548_v33 = vsel %vm546_vm0, %v1127_v22, %v1131_v31  ;;  %v509_v34 = vsel %vm507_vm1, %v1141_v30, %v1142_v29  ;;  %v1132_v22 = vunpack.i.h.bf16 %v1473_v27 }
  0x8d   : > { %v1485_v35 = vpop.permute.xlu1 %1149  ;;  %v1487_v36 = vpop.permute.xlu0 %1144  ;;  %v602_v37 = vpack.c.bf16 %v548_v33, %v548_v33  ;;  %v593_v42 = vpack.c.bf16 %v509_v34, %v470_v40 }
  0x8e   : > { %v1151_v38 = vunpack.i.l.bf16 %v1485_v35  ;;  %v1146_v39 = vunpack.i.l.bf16 %v1487_v36  ;;  %v549_v40 = vsel %vm546_vm0, %v1131_v31, %v1132_v22 }
  0x8f   : > { %1068 = vmatprep.subr.msk.bf16.mxu0 %vm621_vm3, %v602_v37 }
  0x90   : > { %656 = vmatpush1.bf16.msra.mxu0 %v623_v41  ;;  %v469_v43 = vsel %vm468_vm2, %v1146_v39, %v1136_v28  ;;  %v508_v44 = vsel %vm507_vm1, %v1151_v38, %v1141_v30 }
  0x91   : > { %v1498_v45 = vpop.permute.xlu1 %1159  ;;  %v1500_v46 = vpop.permute.xlu0 %1154  ;;  %657 = vmatprep.subr.bf16.mxu0 %v593_v42  ;;  %v592_v47 = vpack.c.bf16 %v508_v44, %v469_v43 }
  0x92   : > { %v1162_v48 = vunpack.i.h.bf16 %v1498_v45  ;;  %v1161_v49 = vunpack.i.l.bf16 %v1498_v45  ;;  %v1157_v50 = vunpack.i.h.bf16 %v1500_v46  ;;  %v1156_v51 = vunpack.i.l.bf16 %v1500_v46 }
  0x94   : > { %658 = vmatpush1.bf16.msra.mxu0 %v592_v47  ;;  %v395_v52 = vsel %vm393_vm4, %v1156_v51, %v1157_v50  ;;  %v431_v53 = vsel %vm429_vm5, %v1161_v49, %v1162_v48 }
  0x95   : > { %v1512_v54 = vpop.permute.xlu1 %1169  ;;  %v1514_v55 = vpop.permute.xlu0 %1164  ;;  %v584_v56 = vpack.c.bf16 %v431_v53, %v395_v52  ;;  %v1152_v52 = vunpack.i.h.bf16 %v1485_v35  ;;  %v603_v53 = vpack.c.bf16 %v549_v40, %v549_v40  ;;  %v1572_v35 = vld [vmem:[%s1811_s1] sm:$0x3] }
  0x96   : > { %v1171_v57 = vunpack.i.l.bf16 %v1512_v54  ;;  %v1166_v58 = vunpack.i.l.bf16 %v1514_v55  ;;  %v1172_v26 = vunpack.i.h.bf16 %v1512_v54 }
  0x97   : > { %659 = vmatprep.subr.bf16.mxu0 %v584_v56  ;;  %v1147_v56 = vunpack.i.h.bf16 %v1487_v36 }
  0x98   : > { %v394_v59 = vsel %vm393_vm4, %v1166_v58, %v1156_v51  ;;  %v430_v60 = vsel %vm429_vm5, %v1171_v57, %v1161_v49 }
  0x99   : > { %v1520_v61 = vpop.permute.xlu1 %1179  ;;  %v1522_v62 = vpop.permute.xlu0 %1174  ;;  %v583_v63 = vpack.c.bf16 %v430_v60, %v394_v59 }
  0x9a   : > { %v1182_v3 = vunpack.i.h.bf16 %v1520_v61  ;;  %v1181_v4 = vunpack.i.l.bf16 %v1520_v61  ;;  %v1177_v6 = vunpack.i.h.bf16 %v1522_v62  ;;  %v1176_v7 = vunpack.i.l.bf16 %v1522_v62 }
  0x9b   : > { %660 = vmatpush1.bf16.msra.mxu0 %v583_v63 }
  0x9c   : > { %v323_v13 = vsel %vm321_vm6, %v1176_v7, %v1177_v6  ;;  %v359_v14 = vsel %vm357_vm7, %v1181_v4, %v1182_v3 }
  0x9d   : > { %v1534_v16 = vpop.permute.xlu1 %1189  ;;  %v1536_v17 = vpop.permute.xlu0 %1184  ;;  %v575_v18 = vpack.c.bf16 %v359_v14, %v323_v13  ;;  %v629_v13 = vsel %vm621_vm3, %v603_v53, 0  ;;  %v432_v53 = vsel %vm429_vm5, %v1162_v48, %v1172_v26 }
  0x9e   : > { %v1191_v19 = vunpack.i.l.bf16 %v1534_v16  ;;  %v1186_v21 = vunpack.i.l.bf16 %v1536_v17 }
  0x9f   : > { %661 = vmatprep.subr.bf16.mxu0 %v575_v18 }
  0xa0   : > { %v322_v23 = vsel %vm321_vm6, %v1186_v21, %v1176_v7  ;;  %v358_v24 = vsel %vm357_vm7, %v1191_v19, %v1181_v4  ;;  %v471_v19 = vsel %vm468_vm2, %v1137_v25, %v1147_v56  ;;  %v510_v21 = vsel %vm507_vm1, %v1142_v29, %v1152_v52 }
  0xa1   : > { %v1543_v28 = vpop.permute.xlu1 %1199  ;;  %v1545_v30 = vpop.permute.xlu0 %1194  ;;  %v574_v32 = vpack.c.bf16 %v358_v24, %v322_v23  ;;  %v1167_v29 = vunpack.i.h.bf16 %v1514_v55 }
  0xa2   : > { %v1201_v33 = vunpack.i.l.bf16 %v1543_v28  ;;  %v1197_v34 = vunpack.i.h.bf16 %v1545_v30  ;;  %v1196_v37 = vunpack.i.l.bf16 %v1545_v30 }
  0xa3   : > { %662 = vmatpush1.bf16.msra.mxu0 %v574_v32  ;;  %v396_v55 = vsel %vm393_vm4, %v1157_v50, %v1167_v29 }
  0xa4   : > { %v287_v38 = vsel %vm285_vm8, %v1196_v37, %v1197_v34  ;;  %v286_v39 = vsel %vm285_vm8, %v1201_v33, %v1196_v37  ;;  %v594_v37 = vpack.c.bf16 %v510_v21, %v471_v19  ;;  %v585_v48 = vpack.c.bf16 %v432_v53, %v396_v55 }
  0xa5   : > { %v1557_v41 = vpop.permute.xlu1 %1209  ;;  %v1205_v42 = vpop.permute.xlu0 %1204  ;;  %v566_v43 = vpack.c.bf16 %v287_v38, %v1371_v0  ;;  %v565_v44 = vpack.c.bf16 %v286_v39, %v1377_v2 }
  0xa6   : > { %v1211_v47 = vunpack.i.l.bf16 %v1557_v41  ;;  %v1207_v49 = vunpack.i.h.bf16 %v1205_v42  ;;  %v1206_v51 = vunpack.i.l.bf16 %v1205_v42 }
  0xa7   : > { %663 = vmatprep.subr.bf16.mxu0 %v566_v43 }
  0xa8   : > { %v552_v27 = vsel %vm546_vm0, %v1207_v49, %v1211_v47  ;;  %664 = vmatpush1.bf16.msra.mxu0 %v565_v44  ;;  %v550_v31 = vsel %vm546_vm0, %v1132_v22, %v1206_v51  ;;  %v551_v0 = vsel %vm546_vm0, %v1206_v51, %v1207_v49 }
  0xa9   : > { %v606_v2 = vpack.c.bf16 %v552_v27, %v552_v27  ;;  %v1220_v57 = vpop.permute.xlu1 %1219  ;;  %v1215_v58 = vpop.permute.xlu0 %1214  ;;  %v604_v59 = vpack.c.bf16 %v550_v31, %v550_v31  ;;  %v605_v36 = vpack.c.bf16 %v551_v0, %v551_v0 }
  0xaa   : > { %v1222_v60 = vunpack.i.h.bf16 %v1220_v57  ;;  %v1221_v63 = vunpack.i.l.bf16 %v1220_v57  ;;  %v1217_v4 = vunpack.i.h.bf16 %v1215_v58  ;;  %v1216_v7 = vunpack.i.l.bf16 %v1215_v58 }
  0xab   : > { %1070 = vmatprep.subr.msk.bf16.mxu1 %vm621_vm3, %v604_v59  ;;  %1072 = vmatprep.subr.msk.bf16.mxu0 %vm621_vm3, %v606_v2  ;;  %v635_v14 = vsel %vm621_vm3, %v605_v36, 0  ;;  %v1192_v58 = vunpack.i.h.bf16 %v1534_v16  ;;  %v1187_v59 = vunpack.i.h.bf16 %v1536_v17 }
  0xac   : > { %1069 = vmatmul.mubr.msk.bf16.vlgmr.msra.gmra.mxu0 %vm617_vm9, %v1572_v35  ;;  %697 = vmatpush1.bf16.msra.mxu1 %v629_v13  ;;  %v472_v18 = vsel %vm468_vm2, %v1147_v56, %v1216_v7  ;;  %v511_v24 = vsel %vm507_vm1, %v1152_v52, %v1221_v63  ;;  %v512_v32 = vsel %vm507_vm1, %v1221_v63, %v1222_v60 }
  0xad   : > { %738 = vmatpush1.bf16.msra.mxu0 %v635_v14  ;;  %v1587_v22 = vpop.permute.xlu1 %499  ;;  %v1589_v23 = vpop.permute.xlu0 %1224  ;;  %763 = vmatprep.mubr.bf16.mxu0 %v1310_v12  ;;  %v473_v33 = vsel %vm468_vm2, %v1216_v7, %v1217_v4  ;;  %v595_v25 = vpack.c.bf16 %v511_v24, %v472_v18  ;;  %v324_v19 = vsel %vm321_vm6, %v1177_v6, %v1187_v59  ;;  %v1202_v6 = vunpack.i.h.bf16 %v1543_v28 }
  0xae   : > { %v1226_v20 = vunpack.i.l.bf16 %v1589_v23  ;;  %v513_v38 = vsel %vm507_vm1, %v1222_v60, %v1587_v22  ;;  %v596_v40 = vpack.c.bf16 %v512_v32, %v473_v33  ;;  %v360_v16 = vsel %vm357_vm7, %v1182_v3, %v1192_v58 }
  0xaf   : > { %698 = vmatprep.subr.bf16.mxu1 %v595_v25  ;;  %v576_v3 = vpack.c.bf16 %v360_v16, %v324_v19 }
  0xb0   : > { %v474_v39 = vsel %vm468_vm2, %v1217_v4, %v1226_v20  ;;  %699 = vmatpush1.bf16.msra.mxu1 %v594_v37 }
  0xb1   : > { %v1235_v42 = vpop.permute.xlu1 %1234  ;;  %v1230_v43 = vpop.permute.xlu0 %1229  ;;  %v597_v44 = vpack.c.bf16 %v513_v38, %v474_v39  ;;  %v1212_v38 = vunpack.i.h.bf16 %v1557_v41 }
  0xb2   : > { %v1237_v49 = vunpack.i.h.bf16 %v1235_v42  ;;  %v1236_v51 = vunpack.i.l.bf16 %v1235_v42  ;;  %v1232_v52 = vunpack.i.h.bf16 %v1230_v43  ;;  %v1231_v54 = vunpack.i.l.bf16 %v1230_v43 }
  0xb3   : > { %739 = vmatprep.subr.bf16.mxu0 %v597_v44  ;;  %v288_v44 = vsel %vm285_vm8, %v1197_v34, %v1202_v6  ;;  %v553_v30 = vsel %vm546_vm0, %v1211_v47, %v1212_v38 }
  0xb4   : > { %740 = vmatpush1.bf16.msra.mxu0 %v596_v40  ;;  %v397_v56 = vsel %vm393_vm4, %v1167_v29, %v1231_v54  ;;  %v433_v27 = vsel %vm429_vm5, %v1172_v26, %v1236_v51  ;;  %v434_v31 = vsel %vm429_vm5, %v1236_v51, %v1237_v49  ;;  %v398_v0 = vsel %vm393_vm4, %v1231_v54, %v1232_v52 }
  0xb5   : > { %v1613_v2 = vpop.permute.xlu1 %423  ;;  %v1615_v57 = vpop.permute.xlu0 %387  ;;  %v586_v46 = vpack.c.bf16 %v433_v27, %v397_v56  ;;  %v587_v60 = vpack.c.bf16 %v434_v31, %v398_v0  ;;  %v567_v31 = vpack.c.bf16 %v288_v44, %v1374_v1  ;;  %v1227_v0 = vunpack.i.h.bf16 %v1589_v23 }
  0xb6   : > { %v435_v50 = vsel %vm429_vm5, %v1237_v49, %v1613_v2  ;;  %v399_v45 = vsel %vm393_vm4, %v1232_v52, %v1615_v57 }
  0xb7   : > { %v588_v36 = vpack.c.bf16 %v435_v50, %v399_v45  ;;  %700 = vmatprep.subr.bf16.mxu1 %v586_v46 }
  0xb8   : > { %701 = vmatpush1.bf16.msra.mxu1 %v585_v48  ;;  %v1312_v48 = vmov 0.0  }
  0xb9   : > { %v1245_v63 = vpop.permute.xlu1 %1244  ;;  %v1240_v4 = vpop.permute.xlu0 %1239  ;;  %741 = vmatprep.subr.bf16.mxu0 %v588_v36  ;;  %v475_v36 = vsel %vm468_vm2, %v1226_v20, %v1227_v0 }
  0xba   : > { %v1247_v7 = vunpack.i.h.bf16 %v1245_v63  ;;  %v1246_v13 = vunpack.i.l.bf16 %v1245_v63  ;;  %v1242_v14 = vunpack.i.h.bf16 %v1240_v4  ;;  %v1241_v18 = vunpack.i.l.bf16 %v1240_v4  ;;  %742 = vmatpush1.bf16.msra.mxu0 %v587_v60 }
  0xbc   : > { %v325_v17 = vsel %vm321_vm6, %v1187_v59, %v1241_v18  ;;  %v361_v21 = vsel %vm357_vm7, %v1192_v58, %v1246_v13  ;;  %v362_v24 = vsel %vm357_vm7, %v1246_v13, %v1247_v7  ;;  %v326_v32 = vsel %vm321_vm6, %v1241_v18, %v1242_v14 }
  0xbd   : > { %v1633_v33 = vpop.permute.xlu1 %351  ;;  %v1635_v25 = vpop.permute.xlu0 %315  ;;  %v577_v26 = vpack.c.bf16 %v361_v21, %v325_v17  ;;  %v578_v37 = vpack.c.bf16 %v362_v24, %v326_v32 }
  0xbe   : > { %v363_v62 = vsel %vm357_vm7, %v1247_v7, %v1633_v33  ;;  %v327_v61 = vsel %vm321_vm6, %v1242_v14, %v1635_v25 }
  0xbf   : > { %v579_v29 = vpack.c.bf16 %v363_v62, %v327_v61  ;;  %702 = vmatprep.subr.bf16.mxu1 %v577_v26 }
  0xc0   : > { %703 = vmatpush1.bf16.msra.mxu1 %v576_v3 }
  0xc1   : > { %v1643_v39 = vpop.permute.xlu1 %279  ;;  %v1250_v40 = vpop.permute.xlu0 %1249  ;;  %743 = vmatprep.subr.bf16.mxu0 %v579_v29 }
  0xc2   : > { %v1252_v42 = vunpack.i.h.bf16 %v1250_v40  ;;  %v1251_v43 = vunpack.i.l.bf16 %v1250_v40  ;;  %744 = vmatpush1.bf16.msra.mxu0 %v578_v37 }
  0xc4   : > { %v290_v49 = vsel %vm285_vm8, %v1251_v43, %v1252_v42  ;;  %v289_v28 = vsel %vm285_vm8, %v1202_v6, %v1251_v43  ;;  %v291_v51 = vsel %vm285_vm8, %v1252_v42, %v1643_v39 }
  0xc5   : > { %v569_v52 = vpack.c.bf16 %v290_v49, %v1411_v10  ;;  %v1260_v54 = vpop.permute.xlu1 %1259  ;;  %v1255_v55 = vpop.permute.xlu0 %1254  ;;  %v568_v53 = vpack.c.bf16 %v289_v28, %v1384_v5  ;;  %v570_v56 = vpack.c.bf16 %v291_v51, %v1414_v11  ;;  %v607_v5 = vpack.c.bf16 %v553_v30, %v553_v30 }
  0xc6   : > { %v1257_v34 = vunpack.i.h.bf16 %v1255_v55  ;;  %v1256_v27 = vunpack.i.l.bf16 %v1255_v55  ;;  %v1262_v46 = vunpack.i.h.bf16 %v1260_v54  ;;  %v1261_v50 = vunpack.i.l.bf16 %v1260_v54 }
  0xc7   : > { %704 = vmatprep.subr.bf16.mxu1 %v568_v53  ;;  %745 = vmatprep.subr.bf16.mxu0 %v570_v56  ;;  %v641_v23 = vsel %vm621_vm3, %v607_v5, 0 }
  0xc8   : > { %v554_v10 = vsel %vm546_vm0, %v1212_v38, %v1256_v27  ;;  %705 = vmatpush1.bf16.msra.mxu1 %v567_v31  ;;  %746 = vmatpush1.bf16.msra.mxu0 %v569_v52  ;;  %v555_v11 = vsel %vm546_vm0, %v1256_v27, %v1257_v34  ;;  %v477_v60 = vsel %vm468_vm2, %v1261_v50, %v1262_v46 }
  0xc9   : > { %v608_v41 = vpack.c.bf16 %v554_v10, %v554_v10  ;;  %v506_v45 = vpop.permute.xlu1 %505  ;;  %v1265_v47 = vpop.permute.xlu0 %1264  ;;  %1087 = vmatprep.subr.bf16.mxu0 %v1312_v48  ;;  %v609_v1 = vpack.c.bf16 %v555_v11, %v555_v11  ;;  %v476_v4 = vsel %vm468_vm2, %v1227_v0, %v1261_v50 }
  0xca   : > { %v1267_v58 = vunpack.i.h.bf16 %v1265_v47  ;;  %v1266_v59 = vunpack.i.l.bf16 %v1265_v47 }
  0xcb   : > { %1071 = vmatmul.mubr.msk.bf16.vlgmr.msra.gmra.mxu1 %vm617_vm9, %v1572_v35  ;;  %1073 = vmatmul.mubr.msk.bf16.vlgmr.msra.gmra.mxu0 %vm617_vm9, %v1572_v35  ;;  %v647_v63 = vsel %vm621_vm3, %v609_v1, 0 }
  0xcc   : > { %v516_v7 = vsel %vm507_vm1, %v1267_v58, %v506_v45  ;;  %v514_v13 = vsel %vm507_vm1, %v1587_v22, %v1266_v59  ;;  %1074 = vmatprep.subr.msk.bf16.mxu1 %vm621_vm3, %v608_v41  ;;  %1088 = vmatpush3.bf16.msra.mxu0 %v647_v63  ;;  %v515_v20 = vsel %vm507_vm1, %v1266_v59, %v1267_v58 }
  0xcd   : > { %v600_v14 = vpack.c.bf16 %v516_v7, %v477_v60  ;;  %v598_v18 = vpack.c.bf16 %v514_v13, %v475_v36  ;;  %779 = vmatpush1.bf16.msra.mxu1 %v641_v23  ;;  %v1275_v19 = vpop.permute.xlu1 %1274  ;;  %v1270_v16 = vpop.permute.xlu0 %1269  ;;  %v599_v17 = vpack.c.bf16 %v515_v20, %v476_v4  ;;  %1089 = vmatprep.subr.bf16.mxu0 %v1312_v48 }
  0xce   : > { %v1277_v21 = vunpack.i.h.bf16 %v1275_v19  ;;  %v1276_v24 = vunpack.i.l.bf16 %v1275_v19  ;;  %v1272_v32 = vunpack.i.h.bf16 %v1270_v16  ;;  %v1271_v26 = vunpack.i.l.bf16 %v1270_v16  ;;  %804 = vmatprep.mubr.bf16.mxu1 %v1310_v12  ;;  %1097 = vmatprep.mubr.msk.bf16.mxu0 %vm1313_vm10, %v1312_v48 }
  0xcf   : > { %780 = vmatprep.subr.bf16.mxu1 %v599_v17 }
  0xd0   : > { %v436_v22 = vsel %vm429_vm5, %v1613_v2, %v1276_v24  ;;  %v400_v62 = vsel %vm393_vm4, %v1615_v57, %v1271_v26  ;;  %1090 = vmatpush3.bf16.msra.mxu0 %v600_v14  ;;  %v401_v61 = vsel %vm393_vm4, %v1271_v26, %v1272_v32  ;;  %v591_v3 = vpack.c.bf16 %v1277_v21, %v1272_v32 }
  0xd1   : > { %v589_v6 = vpack.c.bf16 %v436_v22, %v400_v62  ;;  %781 = vmatpush1.bf16.msra.mxu1 %v598_v18  ;;  %v1285_v29 = vpop.permute.xlu1 %1284  ;;  %v1280_v37 = vpop.permute.xlu0 %1279  ;;  %v437_v12 = vsel %vm429_vm5, %v1276_v24, %v1277_v21  ;;  %1091 = vmatprep.subr.bf16.mxu0 %v1312_v48 }
  0xd2   : > { %v1287_v38 = vunpack.i.h.bf16 %v1285_v29  ;;  %v1286_v40 = vunpack.i.l.bf16 %v1285_v29  ;;  %v1282_v42 = vunpack.i.h.bf16 %v1280_v37  ;;  %v1281_v43 = vunpack.i.l.bf16 %v1280_v37 }
  0xd3   : > { %v590_v2 = vpack.c.bf16 %v437_v12, %v401_v61 }
  0xd4   : > { %v364_v57 = vsel %vm357_vm7, %v1633_v33, %v1286_v40  ;;  %v328_v44 = vsel %vm321_vm6, %v1635_v25, %v1281_v43  ;;  %1092 = vmatpush3.bf16.msra.mxu0 %v591_v3  ;;  %v329_v49 = vsel %vm321_vm6, %v1281_v43, %v1282_v42  ;;  %v582_v28 = vpack.c.bf16 %v1287_v38, %v1282_v42 }
  0xd5   : > { %782 = vmatprep.subr.bf16.mxu1 %v590_v2  ;;  %v1290_v51 = vpop.permute.xlu0 %1289  ;;  %v365_v52 = vsel %vm357_vm7, %v1286_v40, %v1287_v38  ;;  %1093 = vmatprep.subr.bf16.mxu0 %v1312_v48  ;;  %v580_v54 = vpack.c.bf16 %v364_v57, %v328_v44 }
  0xd6   : > { %783 = vmatpush1.bf16.msra.mxu1 %v589_v6  ;;  %v1292_v55 = vunpack.i.h.bf16 %v1290_v51  ;;  %v1291_v53 = vunpack.i.l.bf16 %v1290_v51  ;;  %v581_v56 = vpack.c.bf16 %v365_v52, %v329_v49 }
  0xd8   : > { %v292_v33 = vsel %vm285_vm8, %v1643_v39, %v1291_v53  ;;  %784 = vmatprep.subr.bf16.mxu1 %v581_v56  ;;  %1094 = vmatpush3.bf16.msra.mxu0 %v582_v28  ;;  %v293_v25 = vsel %vm285_vm8, %v1291_v53, %v1292_v55  ;;  %v573_v34 = vpack.c.bf16 %v1292_v55, %v1446_v15 }
  0xd9   : > { %v572_v30 = vpack.c.bf16 %v293_v25, %v1408_v9  ;;  %1095 = vmatprep.subr.bf16.mxu0 %v1312_v48  ;;  %v571_v27 = vpack.c.bf16 %v292_v33, %v1405_v8 }
  0xda   : > { %785 = vmatpush1.bf16.msra.mxu1 %v580_v54 }
  0xdb   : > { %786 = vmatprep.subr.bf16.mxu1 %v572_v30 }
  0xdc   : > { %1096 = vmatpush3.bf16.msra.mxu0 %v573_v34 }
  0xde   : > { %787 = vmatpush1.bf16.msra.mxu1 %v571_v27  ;;  %v615_v39 = vpop.permute.xlu1 %614 }
  0xdf   : > { %1098 = vmatmul.mubr.msk.bf16.vlgmr.msra.gmra.mxu0 %vm617_vm9, %v1572_v35 }
  0xe1   : > { %1075 = vmatmul.mubr.msk.bf16.vlgmr.msra.gmra.mxu1 %vm617_vm9, %v1572_v35 }
 0x16c   : > { %v683_v31 = vpop.f32.mrf.mxu0 }
 0x16d   : > { %v1708_v9 = vadd.f32 %v683_v31, %v615_v39 }
 0x16e   : > { %v685_v0 = vpop.f32.mrf.mxu0 }
 0x16f   : > { %v1710_v46 = vadd.f32 %v685_v0, %v615_v39 }
 0x170   : > { %v687_v15 = vpop.f32.mrf.mxu0 }
 0x171   : > { %v861_v8 = vcombine.low %v1708_v9, %v1710_v46 }
 0x172   : > { %v688_v50 = vpop.f32.mrf.mxu0 }
 0x173   : > { %869 = vst [vmem:[%s1715_s19] sm:$0xff] %v861_v8 }
 0x18b   : > { %v724_v35 = vpop.f32.mrf.mxu1  ;;  %v765_v10 = vpop.f32.mrf.mxu0 }
 0x18c   : > { %v1720_v5 = vadd.f32 %v724_v35, %v615_v39  ;;  %v1722_v11 = vadd.f32 %v765_v10, %v615_v39 }
 0x18d   : > { %v726_v41 = vpop.f32.mrf.mxu1  ;;  %v767_v45 = vpop.f32.mrf.mxu0 }
 0x18e   : > { %v1724_v47 = vadd.f32 %v726_v41, %v615_v39  ;;  %v1726_v48 = vadd.f32 %v767_v45, %v615_v39 }
 0x18f   : > { %v728_v1 = vpop.f32.mrf.mxu1  ;;  %v769_v58 = vpop.f32.mrf.mxu0 }
 0x190   : > { %v862_v59 = vcombine.low %v1720_v5, %v1724_v47  ;;  %v863_v36 = vcombine.low %v1722_v11, %v1726_v48 }
 0x191   : > { %v729_v60 = vpop.f32.mrf.mxu1  ;;  %v770_v63 = vpop.f32.mrf.mxu0 }
 0x192   : > { %870 = vst [vmem:[%s1715_s19 + $0x8] sm:$0xff] %v862_v59  ;;  %871 = vst [vmem:[%s1715_s19 + $0x10] sm:$0xff] %v863_v36 }
 0x19f   : > { %v847_v4 = vpop.f32.mrf.mxu0 }
 0x1a0   : > { %v1734_v7 = vadd.f32 %v847_v4, %v615_v39 }
 0x1a1   : > { %v806_v13 = vpop.f32.mrf.mxu1  ;;  %v1099_v23 = vpop.f32.mrf.mxu0 }
 0x1a2   : > { %874 = vst.msk [vmem:[%s1715_s19 + $0x20] sm:$0xf] %vm873_vm11, %v1734_v7  ;;  %v1739_v18 = vadd.f32 %v806_v13, %v615_v39 }
 0x1a3   : > { %v808_v20 = vpop.f32.mrf.mxu1  ;;  %v850_v14 = vpop.f32.mrf.mxu0 }
 0x1a4   : > { %v1741_v19 = vadd.f32 %v808_v20, %v615_v39  ;;  %878 = sbr.rel (%p1077_p4) target bundleno = 427 (0x1ab), region = 40 }
 0x1a5   : > { %v810_v16 = vpop.f32.mrf.mxu1  ;;  %v1100_v17 = vpop.f32.mrf.mxu0 }
 0x1a6   : > { %v864_v21 = vcombine.low %v1739_v18, %v1741_v19 }
 0x1a7   : > { %v811_v24 = vpop.f32.mrf.mxu1 }
 0x1a8   : > { %872 = vst [vmem:[%s1715_s19 + $0x18] sm:$0xff] %v864_v21 }
 0x1a9   : > { %vm879_vm12 = vcmask 3072   ;;  %v1314_v32 = vmov 0.0  }
 0x1aa   : > { %880 = vst.msk [vmem:[%s1815_s5] sm:$0xf] %vm879_vm12, %v1314_v32  ;;  %881 = vst.msk [vmem:[%s1816_s6] sm:$0xf] %vm879_vm12, %v1314_v32 }
 0x1ab PF: > { %v886_v26 = vlaneseq  ;;  %v882_v62 = vld [vmem:[%s1813_s3] sm:$0xff]  ;;  %vm961_vm13 = vcmask 3072  }
 0x1ad   : > { %v887_v22 = vshrl.u32 %v886_v26, 7 }
 0x1af   : > { %v888_v61 = vsub.s32 0, %v887_v22  ;;  %v892_v3 = vsub.s32 1, %v887_v22  ;;  %v896_v6 = vsub.s32 2, %v887_v22  ;;  %v900_v29 = vsub.s32 3, %v887_v22 }
 0x1b0   : > { %v904_v37 = vsub.s32 4, %v887_v22  ;;  %v908_v12 = vsub.s32 5, %v887_v22  ;;  %v912_v38 = vsub.s32 6, %v887_v22  ;;  %v916_v49 = vsub.s32 7, %v887_v22 }
 0x1b1   : > { %v889_v40 = vrot.slane %v882_v62, %v888_v61  ;;  %v893_v42 = vrot.slane %v882_v62, %v892_v3  ;;  %v897_v43 = vrot.slane %v882_v62, %v896_v6  ;;  %v901_v2 = vrot.slane %v882_v62, %v900_v29 }
 0x1b2   : > { %v905_v57 = vrot.slane %v882_v62, %v904_v37  ;;  %v909_v44 = vrot.slane %v882_v62, %v908_v12  ;;  %v913_v55 = vrot.slane %v882_v62, %v912_v38  ;;  %v917_v30 = vrot.slane %v882_v62, %v916_v49  ;;  %v940_v38 = vld [vmem:[%s1815_s5] sm:$0xf] }
 0x1b3   : > { %v931_v28 = vmul.f32 %v889_v40, %v1708_v9  ;;  %v932_v51 = vmul.f32 %v893_v42, %v1710_v46  ;;  %v933_v52 = vmul.f32 %v897_v43, %v1720_v5  ;;  %v934_v54 = vmul.f32 %v901_v2, %v1724_v47  ;;  %v963_v42 = vld [vmem:[%s1816_s6] sm:$0xf] }
 0x1b4   : > { %v935_v53 = vmul.f32 %v905_v57, %v1722_v11  ;;  %v936_v34 = vmul.f32 %v909_v44, %v1726_v48  ;;  %v937_v8 = vmul.f32 %v913_v55, %v1739_v18  ;;  %v938_v59 = vmul.f32 %v917_v30, %v1741_v19 }
 0x1b5   : > { %v941_v56 = vsel %vm621_vm3, %v931_v28, 0.0  ;;  %v942_v33 = vsel %vm621_vm3, %v932_v51, 0.0  ;;  %v944_v25 = vsel %vm621_vm3, %v933_v52, 0.0  ;;  %v946_v39 = vsel %vm621_vm3, %v934_v54, 0.0 }
 0x1b6   : > { %v943_v27 = vadd.f32 %v942_v33, %v941_v56  ;;  %v964_v31 = vmul.f32 %v931_v28, %v1708_v9  ;;  %v965_v0 = vmul.f32 %v932_v51, %v1710_v46  ;;  %v966_v15 = vmul.f32 %v933_v52, %v1720_v5  ;;  %v1078_v9 = vld [vmem:[%s1813_s3 + $0x8] ss:$0 sm:$0xff] }
 0x1b7   : > { %v967_v35 = vmul.f32 %v934_v54, %v1724_v47  ;;  %v948_v10 = vsel %vm621_vm3, %v935_v53, 0.0  ;;  %v968_v41 = vmul.f32 %v935_v53, %v1722_v11  ;;  %v950_v47 = vsel %vm621_vm3, %v936_v34, 0.0 }
 0x1b8   : > { %v945_v50 = vadd.f32 %v944_v25, %v943_v27  ;;  %v973_v45 = vsel %vm621_vm3, %v964_v31, 0.0  ;;  %v974_v1 = vsel %vm621_vm3, %v965_v0, 0.0  ;;  %v976_v5 = vsel %vm621_vm3, %v966_v15, 0.0 }
 0x1b9   : > { %v975_v58 = vadd.f32 %v974_v1, %v973_v45  ;;  %v969_v36 = vmul.f32 %v936_v34, %v1726_v48  ;;  %v978_v11 = vsel %vm621_vm3, %v967_v35, 0.0  ;;  %v939_v4 = vmul.f32 %v1078_v9, %v1734_v7 }
 0x1ba   : > { %v947_v46 = vadd.f32 %v946_v39, %v945_v50  ;;  %v952_v13 = vsel %vm621_vm3, %v937_v8, 0.0  ;;  %v970_v23 = vmul.f32 %v937_v8, %v1739_v18  ;;  %v980_v20 = vsel %vm621_vm3, %v968_v41, 0.0 }
 0x1bb   : > { %v977_v63 = vadd.f32 %v976_v5, %v975_v58  ;;  %v954_v17 = vsel %vm621_vm3, %v938_v59, 0.0  ;;  %v971_v21 = vmul.f32 %v938_v59, %v1741_v19  ;;  %v982_v48 = vsel %vm621_vm3, %v969_v36, 0.0 }
 0x1bc   : > { %v949_v60 = vadd.f32 %v948_v10, %v947_v46  ;;  %v956_v26 = vsel %vm873_vm11, %v939_v4, 0.0  ;;  %v972_v22 = vmul.f32 %v939_v4, %v1734_v7  ;;  %v984_v62 = vsel %vm621_vm3, %v970_v23, 0.0 }
 0x1bd   : > { %v979_v16 = vadd.f32 %v978_v11, %v977_v63  ;;  %v986_v3 = vsel %vm621_vm3, %v971_v21, 0.0 }
 0x1be   : > { %v951_v14 = vadd.f32 %v950_v47, %v949_v60  ;;  %v988_v37 = vsel %vm873_vm11, %v972_v22, 0.0 }
 0x1bf   : > { %v981_v32 = vadd.f32 %v980_v20, %v979_v16 }
 0x1c0   : > { %v953_v24 = vadd.f32 %v952_v13, %v951_v14 }
 0x1c1   : > { %v983_v18 = vadd.f32 %v982_v48, %v981_v32 }
 0x1c2   : > { %v955_v61 = vadd.f32 %v954_v17, %v953_v24 }
 0x1c3   : > { %v985_v29 = vadd.f32 %v984_v62, %v983_v18 }
 0x1c4   : > { %v957_v6 = vadd.f32 %v956_v26, %v955_v61 }
 0x1c5   : > { %v987_v19 = vadd.f32 %v986_v3, %v985_v29 }
 0x1c6   : > { %958 = vadd.xlane.f32.xlu0 %v957_v6 }
 0x1c7   : > { %v989_v12 = vadd.f32 %v988_v37, %v987_v19 }
 0x1ca   : > { %990 = vadd.xlane.f32.xlu0 %v989_v12 }
 0x24f   : > { %v959_v7 = vpop.xlane.xlu0 %958 }
 0x250   : > { %v960_v40 = vadd.f32 %v959_v7, %v940_v38 }
 0x252   : > { %962 = vst.msk [vmem:[%s1815_s5] sm:$0xf] %vm961_vm13, %v960_v40 }
 0x253   : > { %v991_v43 = vpop.xlane.xlu0 %990 }
 0x254   : > { %v992_v2 = vadd.f32 %v991_v43, %v963_v42 }
 0x256   : > { %993 = vst.msk [vmem:[%s1816_s6] sm:$0xf] %vm961_vm13, %v992_v2 }
 0x257 PF: > { %s17_s21 = sadd.s32 1, %s1301_s21  }
 0x258   : > { %p14_p5 = scmp.ge.s32.totalorder %s17_s21, 4  }
 0x25a   :  { %16 = sbr.rel (!%p14_p5) target bundleno = 1 (0x1), region = 86 }

// kernel: upsampling_forward.8
= control target key start
LH: loop header
LB: loop body
LE: loop exit
PB: predicated region body
PF: predicated region fallthrough
CT: control target
= control target key end

     0   :  { %s1385_s21 = smov 0   ;;  %s1920_s0 = inlined_call_operand.vmem [shape: f32[2,4,1190], index: 0, kind: input, shape index: {}]   ;;  %s1921_s1 = inlined_call_operand.vmem [shape: bf16[4,36], index: 1, kind: input, shape index: {}]   ;;  %s1922_s2 = inlined_call_operand.vmem [shape: f32[4,1], index: 2, kind: input, shape index: {}]   ;;  %s1923_s3 = inlined_call_operand.vmem [shape: f32[1,1088], index: 3, kind: input, shape index: {}]   ;;  %s1924_s4 = inlined_call_operand.vmem [shape: f32[2,4,1088], index: 4, kind: output, shape index: {0}]   ;;  %s1925_s5 = inlined_call_operand.vmem [shape: f32[4,1], index: 5, kind: output, shape index: {1}]   ;;  %s1926_s6 = inlined_call_operand.vmem [shape: f32[4,1], index: 6, kind: output, shape index: {2}]  }
   0x1 LB: > { %s1391_s22 = sadd.s32 4294967295, %s1336_s21   ;;  %p1091_p0 = scmp.ge.s32.totalorder %s1336_s21, 1  ;;  %s1336_s21 = sphi %s1385_s21, %s17_s21  }
   0x2   : > { %p207_p1 = scmp.lt.s32.totalorder %s1336_s21, 3 }
   0x4   : > { %p208_p2 = pnand %p1091_p0, %p207_p1 }
   0x5   : > { %p237_p3 = scmp.lt.s32.totalorder (!%p208_p2), %s1391_s22, 1  ;;  %s1338_s28 = smov (!%p208_p2), 93  }
   0x6   : > { %211 = sbr.rel (%p208_p2) target bundleno = 597 (0x255), region = 36  ;;  %s1339_s29 = smov (!%p208_p2), 58  }
   0x7   : > { %s1340_s30 = smov (!%p208_p2), 92   ;;  %s1341_s7 = smov (!%p208_p2), 59  }
   0x8   : > { %s1342_s8 = smov (!%p208_p2), 60   ;;  %s1343_s9 = smov (!%p208_p2), 126  }
   0x9   : > { %s1344_s10 = smov (!%p208_p2), 127   ;;  %s1345_s11 = smov (!%p208_p2), 94  }
   0xa   : > { %p1103_p4 = scmp.ne.s32.totalorder (!%p208_p2), %s1391_s22, 0 }
   0xb   : > { %s1397_s23 = scalar_select %p237_p3, %s1391_s22, 1  ;;  %v1346_v16 = vmov 0   ;;  %v637_v32 = vld [vmem:[%s1922_s2] sm:$0xf]  ;;  %vm553_vm0 = vcmask 474112   ;;  %vm398_vm1 = vcmask 760832  }
   0xc   : > { %707 = vmatprep.mubr.bf16.mxu0 %v1346_v16  ;;  %748 = vmatprep.mubr.bf16.mxu1 %v1346_v16  ;;  %vm434_vm2 = vcmask 752640   ;;  %vm514_vm3 = vcmask 482304   ;;  %vm647_vm4 = vcmask 1041408   ;;  %vm474_vm5 = vcmask 490496  }
   0xd   : > { %s1121_s24 = smul.u32 40, %s1397_s23  ;;  %1318 = vset.pattern.permute.xlu0 %v1346_v16  ;;  %vm572_vm6 = vcmask 1043456   ;;  %vm290_vm7 = vcmask 1039360   ;;  %vm326_vm8 = vcmask 1031168   ;;  %vm362_vm9 = vcmask 769024  }
   0xe   : > { %vm643_vm10 = vcmask 293888   ;;  %vm1348_vm11 = vmmov 0   ;;  %s1122_s16 = smul.u32 36, %s1397_s23  ;;  %vm899_vm12 = vcmask 519168  }
   0xf   : > { %s1403_s27 = scalar_lea.vmem %s1920_s0, %s1121_s24 }
  0x10   : > { %v1406_v0 = vld [vmem:[%s1403_s27] sm:$0xff]  ;;  %v1409_v1 = vld [vmem:[%s1403_s27 + $0x8] sm:$0xff]  ;;  %v1446_v12 = vld [vmem:[%s1403_s27 + $0x18] sm:$0xff]  ;;  %s1825_s19 = scalar_lea.vmem %s1924_s4, %s1122_s16 }
  0x11   : > { %v1413_v2 = vcombine.high %v1406_v0, %v1406_v0  ;;  %v268_v3 = vcombine.low %v1409_v1, %v1409_v1  ;;  %v1419_v4 = vcombine.high %v1409_v1, %v1409_v1  ;;  %v267_v9 = vcombine.low %v1406_v0, %v1406_v0  ;;  %v1449_v13 = vld [vmem:[%s1403_s27 + $0x10] sm:$0xff]  ;;  %v253_v23 = vld [vmem:[%s1403_s27 + $0x20] sm:$0xff] }
  0x12   : > { %v1453_v14 = vcombine.high %v1446_v12, %v1446_v12  ;;  %v1459_v15 = vcombine.high %v1449_v13, %v1449_v13  ;;  %v269_v19 = vcombine.low %v1449_v13, %v1449_v13  ;;  %v270_v21 = vcombine.low %v1446_v12, %v1446_v12  ;;  %v1495_v26 = vld [vmem:[%s1403_s27 + $0x20] sm:$0xf] }
  0x13   : > { %v1153_v5 = vpack.i.bf16 %v1409_v1, %v1413_v2  ;;  %v1143_v6 = vpack.i.bf16 %v1413_v2, %v1406_v0  ;;  %v1158_v7 = vpack.i.bf16 %v268_v3, %v1406_v0  ;;  %v1148_v8 = vpack.i.bf16 %v1419_v4, %v1409_v1 }
  0x14   : > { %v1178_v10 = vpack.i.bf16 %v1409_v1, %v267_v9  ;;  %v1173_v11 = vpack.i.bf16 %v1419_v4, %v1406_v0  ;;  %v1228_v17 = vpack.i.bf16 %v1453_v14, %v1446_v12  ;;  %v1223_v18 = vpack.i.bf16 %v1459_v15, %v1449_v13 }
  0x15   : > { %1154 = vrot.lane.b32.xlu1 %v1153_v5, %s1338_s28  ;;  %1144 = vrot.lane.b32.xlu0 %v1143_v6, %s1339_s29  ;;  %v1238_v20 = vpack.i.bf16 %v1449_v13, %v269_v19  ;;  %v1258_v22 = vpack.i.bf16 %v1446_v12, %v270_v21  ;;  %v453_v24 = vcombine.high %v253_v23, %v253_v23 }
  0x16   : > { %v271_v27 = vcombine.low %v1495_v26, %v1495_v26  ;;  %v493_v28 = vcombine.low %v253_v23, %v253_v23  ;;  %v1308_v31 = vpack.i.bf16 %v1495_v26, %v1453_v14 }
  0x17   : > { %v1293_v25 = vpack.i.bf16 %v453_v24, %v253_v23 }
  0x18   : > { %v1303_v29 = vpack.i.bf16 %v253_v23, %v493_v28  ;;  %v1313_v30 = vpack.i.bf16 %v271_v27, %v1446_v12 }
  0x19   : > { %1159 = vrot.lane.b32.xlu1 %v1158_v7, %s1340_s30  ;;  %1149 = vrot.lane.b32.xlu0 %v1148_v8, %s1339_s29 }
  0x1d   : > { %1169 = vrot.lane.b32.xlu1 %v1158_v7, %s1341_s7  ;;  %1164 = vrot.lane.b32.xlu0 %v1153_v5, %s1342_s8 }
  0x21   : > { %1179 = vrot.lane.b32.xlu1 %v1178_v10, %s1340_s30  ;;  %1174 = vrot.lane.b32.xlu0 %v1173_v11, %s1338_s28 }
  0x25   : > { %1189 = vrot.lane.b32.xlu1 %v1178_v10, %s1341_s7  ;;  %1184 = vrot.lane.b32.xlu0 %v1173_v11, %s1342_s8 }
  0x29   : > { %1199 = vrot.lane.b32.xlu1 %v1153_v5, %s1343_s9  ;;  %1194 = vrot.lane.b32.xlu0 %v1158_v7, %s1344_s10 }
  0x2d   : > { %1209 = vrot.lane.b32.xlu1 %v1178_v10, %s1344_s10  ;;  %1204 = vrot.lane.b32.xlu0 %v1158_v7, %s1345_s11 }
  0x31   : > { %1219 = vrot.lane.b32.xlu1 %v1178_v10, %s1345_s11  ;;  %1214 = vrot.lane.b32.xlu0 %v1173_v11, %s1343_s9 }
  0x35   : > { %1229 = vrot.lane.b32.xlu1 %v1228_v17, %s1339_s29  ;;  %1224 = vrot.lane.b32.xlu0 %v1223_v18, %s1339_s29 }
  0x39   : > { %1239 = vrot.lane.b32.xlu1 %v1238_v20, %s1340_s30  ;;  %1234 = vrot.lane.b32.xlu0 %v1223_v18, %s1338_s28 }
  0x3d   : > { %1249 = vrot.lane.b32.xlu1 %v1238_v20, %s1341_s7  ;;  %1244 = vrot.lane.b32.xlu0 %v1223_v18, %s1342_s8 }
  0x41   : > { %1259 = vrot.lane.b32.xlu1 %v1258_v22, %s1340_s30  ;;  %1254 = vrot.lane.b32.xlu0 %v1228_v17, %s1338_s28 }
  0x45   : > { %1269 = vrot.lane.b32.xlu1 %v1258_v22, %s1341_s7  ;;  %1264 = vrot.lane.b32.xlu0 %v1228_v17, %s1342_s8 }
  0x49   : > { %1279 = vrot.lane.b32.xlu1 %v1223_v18, %s1343_s9  ;;  %1274 = vrot.lane.b32.xlu0 %v1238_v20, %s1344_s10 }
  0x4d   : > { %1289 = vrot.lane.b32.xlu1 %v1258_v22, %s1344_s10  ;;  %1284 = vrot.lane.b32.xlu0 %v1238_v20, %s1345_s11 }
  0x51   : > { %356 = vrot.lane.b32.xlu1 %v270_v21, %s1345_s11  ;;  %320 = vrot.lane.b32.xlu0 %v1446_v12, %s1343_s9 }
  0x55   : > { %396 = vrot.lane.b32.xlu1 %v1495_v26, %s1338_s28  ;;  %1294 = vrot.lane.b32.xlu0 %v1293_v25, %s1339_s29 }
  0x59   : > { %1299 = vrot.lane.b32.xlu1 %v1293_v25, %s1342_s8  ;;  %432 = vrot.lane.b32.xlu0 %v271_v27, %s1340_s30 }
  0x5d   : > { %288 = vrot.lane.b32.xlu1 %v271_v27, %s1344_s10  ;;  %1304 = vrot.lane.b32.xlu0 %v1303_v29, %s1341_s7 }
  0x61   : > { %1314 = vrot.lane.b32.xlu1 %v1313_v30, %s1345_s11  ;;  %1309 = vrot.lane.b32.xlu0 %v1308_v31, %s1343_s9 }
  0x65   : > { %640 = vperm.xlu0 %1318, %v637_v32  }
  0x87   : > { %v1514_v33 = vpop.permute.xlu1 %1154  ;;  %v1145_v34 = vpop.permute.xlu0 %1144 }
  0x88   : > { %v1147_v35 = vunpack.i.h.bf16 %v1145_v34  ;;  %v1146_v36 = vunpack.i.l.bf16 %v1145_v34  ;;  %v1157_v45 = vunpack.i.h.bf16 %v1514_v33  ;;  %v1156_v46 = vunpack.i.l.bf16 %v1514_v33 }
  0x8a   : > { %v554_v37 = vsel %vm553_vm0, %v1146_v36, %v1147_v35  ;;  %v400_v58 = vsel %vm398_vm1, %v1156_v46, %v1157_v45 }
  0x8b   : > { %v1517_v38 = vpop.permute.xlu1 %1159  ;;  %v1519_v39 = vpop.permute.xlu0 %1149  ;;  %v627_v43 = vpack.c.bf16 %v554_v37, %v554_v37 }
  0x8c   : > { %v1151_v40 = vunpack.i.l.bf16 %v1519_v39  ;;  %v1162_v41 = vunpack.i.h.bf16 %v1517_v38  ;;  %v1161_v42 = vunpack.i.l.bf16 %v1517_v38  ;;  %v1152_v36 = vunpack.i.h.bf16 %v1519_v39 }
  0x8d   : > { %v649_v55 = vsel %vm647_vm4, %v627_v43, 0 }
  0x8e   : > { %v555_v44 = vsel %vm553_vm0, %v1147_v35, %v1151_v40  ;;  %v436_v54 = vsel %vm434_vm2, %v1161_v42, %v1162_v41 }
  0x8f   : > { %v1529_v47 = vpop.permute.xlu1 %1169  ;;  %v1531_v48 = vpop.permute.xlu0 %1164  ;;  %v628_v49 = vpack.c.bf16 %v555_v44, %v555_v44  ;;  %v592_v62 = vsel %vm572_vm6, %v400_v58, %v436_v54  ;;  %v556_v58 = vsel %vm553_vm0, %v1151_v40, %v1152_v36 }
  0x90   : > { %v1172_v50 = vunpack.i.h.bf16 %v1529_v47  ;;  %v1171_v51 = vunpack.i.l.bf16 %v1529_v47  ;;  %v1167_v52 = vunpack.i.h.bf16 %v1531_v48  ;;  %v1166_v53 = vunpack.i.l.bf16 %v1531_v48 }
  0x91   : > { %1094 = vmatprep.subr.msk.bf16.mxu0 %vm647_vm4, %v628_v49  ;;  %v629_v40 = vpack.c.bf16 %v556_v58, %v556_v58 }
  0x92   : > { %v516_v56 = vsel %vm514_vm3, %v1171_v51, %v1172_v50  ;;  %v476_v57 = vsel %vm474_vm5, %v1166_v53, %v1167_v52  ;;  %686 = vmatpush1.bf16.msra.mxu0 %v649_v55 }
  0x93   : > { %v1551_v59 = vpop.permute.xlu1 %1179  ;;  %v1553_v60 = vpop.permute.xlu0 %1174  ;;  %v601_v61 = vsel %vm572_vm6, %v476_v57, %v516_v56 }
  0x94   : > { %v1181_v63 = vunpack.i.l.bf16 %v1551_v59  ;;  %v1176_v3 = vunpack.i.l.bf16 %v1553_v60  ;;  %v619_v5 = vpack.c.bf16 %v601_v61, %v592_v62  ;;  %v1177_v39 = vunpack.i.h.bf16 %v1553_v60 }
  0x96   : > { %687 = vmatprep.subr.bf16.mxu0 %v619_v5  ;;  %v435_v10 = vsel %vm434_vm2, %v1181_v63, %v1161_v42  ;;  %v399_v11 = vsel %vm398_vm1, %v1176_v3, %v1156_v46 }
  0x97   : > { %v1559_v6 = vpop.permute.xlu1 %1189  ;;  %v1561_v7 = vpop.permute.xlu0 %1184  ;;  %v591_v22 = vsel %vm572_vm6, %v399_v11, %v435_v10 }
  0x98   : > { %v1191_v8 = vunpack.i.l.bf16 %v1559_v6  ;;  %v1186_v9 = vunpack.i.l.bf16 %v1561_v7  ;;  %v1192_v11 = vunpack.i.h.bf16 %v1559_v6  ;;  %v1633_v6 = vld [vmem:[%s1921_s1] sm:$0x3] }
  0x9a   : > { %v515_v17 = vsel %vm514_vm3, %v1191_v8, %v1171_v51  ;;  %v475_v18 = vsel %vm474_vm5, %v1186_v9, %v1166_v53  ;;  %v1182_v9 = vunpack.i.h.bf16 %v1551_v59 }
  0x9b   : > { %v1569_v19 = vpop.permute.xlu1 %1199  ;;  %v1571_v20 = vpop.permute.xlu0 %1194  ;;  %v600_v21 = vsel %vm572_vm6, %v475_v18, %v515_v17 }
  0x9c   : > { %v1197_v23 = vunpack.i.h.bf16 %v1571_v20  ;;  %v1196_v24 = vunpack.i.l.bf16 %v1571_v20  ;;  %v618_v25 = vpack.c.bf16 %v600_v21, %v591_v22  ;;  %v1202_v27 = vunpack.i.h.bf16 %v1569_v19 }
  0x9d   : > { %v1201_v28 = vunpack.i.l.bf16 %v1569_v19  ;;  %v1187_v22 = vunpack.i.h.bf16 %v1561_v7 }
  0x9e   : > { %688 = vmatpush1.bf16.msra.mxu0 %v618_v25  ;;  %v292_v34 = vsel %vm290_vm7, %v1196_v24, %v1197_v23 }
  0x9f   : > { %v1579_v29 = vpop.permute.xlu1 %1209  ;;  %v1581_v30 = vpop.permute.xlu0 %1204  ;;  %v328_v37 = vsel %vm326_vm8, %v1201_v28, %v1202_v27  ;;  %v574_v53 = vsel %vm572_vm6, %v1413_v2, %v292_v34  ;;  %v437_v34 = vsel %vm434_vm2, %v1162_v41, %v1182_v9 }
  0xa0   : > { %v1207_v31 = vunpack.i.h.bf16 %v1581_v30  ;;  %v1206_v32 = vunpack.i.l.bf16 %v1581_v30  ;;  %v1211_v35 = vunpack.i.l.bf16 %v1579_v29 }
  0xa2   : > { %v364_v42 = vsel %vm362_vm9, %v1206_v32, %v1207_v31  ;;  %v291_v54 = vsel %vm290_vm7, %v1211_v35, %v1196_v24  ;;  %v655_v35 = vsel %vm647_vm4, %v629_v40, 0 }
  0xa3   : > { %v1596_v43 = vpop.permute.xlu1 %1219  ;;  %v1598_v44 = vpop.permute.xlu0 %1214  ;;  %v583_v46 = vsel %vm572_vm6, %v328_v37, %v364_v42  ;;  %v573_v8 = vsel %vm572_vm6, %v1406_v0, %v291_v54  ;;  %v517_v37 = vsel %vm514_vm3, %v1172_v50, %v1192_v11  ;;  %v477_v42 = vsel %vm474_vm5, %v1167_v52, %v1187_v22 }
  0xa4   : > { %v1221_v49 = vunpack.i.l.bf16 %v1596_v43  ;;  %v1216_v51 = vunpack.i.l.bf16 %v1598_v44  ;;  %v610_v55 = vpack.c.bf16 %v583_v46, %v574_v53  ;;  %v602_v50 = vsel %vm572_vm6, %v477_v42, %v517_v37 }
  0xa5   : > { %v1222_v40 = vunpack.i.h.bf16 %v1596_v43 }
  0xa6   : > { %v363_v56 = vsel %vm362_vm9, %v1221_v49, %v1206_v32  ;;  %v327_v57 = vsel %vm326_vm8, %v1216_v51, %v1201_v28  ;;  %689 = vmatprep.subr.bf16.mxu0 %v610_v55 }
  0xa7   : > { %v1611_v61 = vpop.permute.xlu1 %1229  ;;  %v1225_v62 = vpop.permute.xlu0 %1224  ;;  %v582_v63 = vsel %vm572_vm6, %v327_v57, %v363_v56 }
  0xa8   : > { %v1231_v2 = vunpack.i.l.bf16 %v1611_v61  ;;  %v1227_v3 = vunpack.i.h.bf16 %v1225_v62  ;;  %v1226_v5 = vunpack.i.l.bf16 %v1225_v62  ;;  %v609_v10 = vpack.c.bf16 %v582_v63, %v573_v8 }
  0xaa   : > { %v559_v17 = vsel %vm553_vm0, %v1227_v3, %v1231_v2  ;;  %v557_v18 = vsel %vm553_vm0, %v1152_v36, %v1226_v5  ;;  %v558_v21 = vsel %vm553_vm0, %v1226_v5, %v1227_v3  ;;  %690 = vmatpush1.bf16.msra.mxu0 %v609_v10  ;;  %v401_v36 = vsel %vm398_vm1, %v1157_v45, %v1177_v39 }
  0xab   : > { %v632_v24 = vpack.c.bf16 %v559_v17, %v559_v17  ;;  %v1626_v0 = vpop.permute.xlu1 %1239  ;;  %v1628_v59 = vpop.permute.xlu0 %1234  ;;  %v630_v60 = vpack.c.bf16 %v557_v18, %v557_v18  ;;  %v631_v25 = vpack.c.bf16 %v558_v21, %v558_v21  ;;  %v593_v48 = vsel %vm572_vm6, %v401_v36, %v437_v34 }
  0xac   : > { %v1241_v28 = vunpack.i.l.bf16 %v1626_v0  ;;  %v1236_v32 = vunpack.i.l.bf16 %v1628_v59  ;;  %v1242_v5 = vunpack.i.h.bf16 %v1626_v0  ;;  %v1237_v8 = vunpack.i.h.bf16 %v1628_v59 }
  0xad   : > { %1096 = vmatprep.subr.msk.bf16.mxu1 %vm647_vm4, %v630_v60  ;;  %1098 = vmatprep.subr.msk.bf16.mxu0 %vm647_vm4, %v632_v24  ;;  %v661_v7 = vsel %vm647_vm4, %v631_v25, 0  ;;  %v1212_v10 = vunpack.i.h.bf16 %v1579_v29  ;;  %v1217_v18 = vunpack.i.h.bf16 %v1598_v44 }
  0xae   : > { %1095 = vmatmul.mubr.msk.bf16.vlgmr.msra.gmra.mxu0 %vm643_vm10, %v1633_v6  ;;  %727 = vmatpush1.bf16.msra.mxu1 %v655_v35  ;;  %v438_v46 = vsel %vm434_vm2, %v1182_v9, %v1241_v28  ;;  %v402_v49 = vsel %vm398_vm1, %v1177_v39, %v1236_v32  ;;  %v620_v39 = vpack.c.bf16 %v602_v50, %v593_v48 }
  0xaf   : > { %768 = vmatpush1.bf16.msra.mxu0 %v661_v7  ;;  %v1250_v38 = vpop.permute.xlu1 %1249  ;;  %v1245_v41 = vpop.permute.xlu0 %1244  ;;  %789 = vmatprep.mubr.bf16.mxu0 %v1346_v16  ;;  %v594_v56 = vsel %vm572_vm6, %v402_v49, %v438_v46  ;;  %v439_v25 = vsel %vm434_vm2, %v1241_v28, %v1242_v5  ;;  %v403_v7 = vsel %vm398_vm1, %v1236_v32, %v1237_v8 }
  0xb0   : > { %v1251_v51 = vunpack.i.l.bf16 %v1250_v38  ;;  %v1246_v33 = vunpack.i.l.bf16 %v1245_v41  ;;  %v1252_v52 = vunpack.i.h.bf16 %v1250_v38  ;;  %v1247_v53 = vunpack.i.h.bf16 %v1245_v41 }
  0xb1   : > { %v595_v48 = vsel %vm572_vm6, %v403_v7, %v439_v25 }
  0xb2   : > { %v518_v45 = vsel %vm514_vm3, %v1192_v11, %v1251_v51  ;;  %v478_v47 = vsel %vm474_vm5, %v1187_v22, %v1246_v33  ;;  %v519_v21 = vsel %vm514_vm3, %v1251_v51, %v1252_v52  ;;  %v479_v22 = vsel %vm474_vm5, %v1246_v33, %v1247_v53 }
  0xb3   : > { %v1662_v54 = vpop.permute.xlu1 %1259  ;;  %v1664_v55 = vpop.permute.xlu0 %1254  ;;  %v603_v57 = vsel %vm572_vm6, %v478_v47, %v518_v45  ;;  %v604_v46 = vsel %vm572_vm6, %v479_v22, %v519_v21  ;;  %v293_v45 = vsel %vm290_vm7, %v1197_v23, %v1212_v10 }
  0xb4   : > { %v1262_v58 = vunpack.i.h.bf16 %v1662_v54  ;;  %v1261_v62 = vunpack.i.l.bf16 %v1662_v54  ;;  %v1257_v63 = vunpack.i.h.bf16 %v1664_v55  ;;  %v1256_v3 = vunpack.i.l.bf16 %v1664_v55 }
  0xb5   : > { %v621_v9 = vpack.c.bf16 %v603_v57, %v594_v56  ;;  %v622_v57 = vpack.c.bf16 %v604_v46, %v595_v48  ;;  %v575_v19 = vsel %vm572_vm6, %v1409_v1, %v293_v45  ;;  %v1347_v45 = vmov 0.0  }
  0xb6   : > { %v441_v11 = vsel %vm434_vm2, %v1261_v62, %v1262_v58  ;;  %v405_v17 = vsel %vm398_vm1, %v1256_v3, %v1257_v63  ;;  %v440_v34 = vsel %vm434_vm2, %v1242_v5, %v1261_v62  ;;  %v404_v35 = vsel %vm398_vm1, %v1237_v8, %v1256_v3 }
  0xb7   : > { %728 = vmatprep.subr.bf16.mxu1 %v621_v9  ;;  %v1685_v24 = vpop.permute.xlu1 %1269  ;;  %v1687_v29 = vpop.permute.xlu0 %1264  ;;  %v1690_v43 = vsel %vm572_vm6, %v405_v17, %v441_v11  ;;  %v596_v33 = vsel %vm572_vm6, %v404_v35, %v440_v34 }
  0xb8   : > { %v1272_v0 = vunpack.i.h.bf16 %v1685_v24  ;;  %v1271_v59 = vunpack.i.l.bf16 %v1685_v24  ;;  %v1267_v60 = vunpack.i.h.bf16 %v1687_v29  ;;  %v1266_v44 = vunpack.i.l.bf16 %v1687_v29  ;;  %729 = vmatpush1.bf16.msra.mxu1 %v620_v39 }
  0xba   : > { %v520_v36 = vsel %vm514_vm3, %v1252_v52, %v1271_v59  ;;  %v521_v37 = vsel %vm514_vm3, %v1271_v59, %v1272_v0  ;;  %v480_v42 = vsel %vm474_vm5, %v1247_v53, %v1266_v44  ;;  %v481_v38 = vsel %vm474_vm5, %v1266_v44, %v1267_v60 }
  0xbb   : > { %v1280_v41 = vpop.permute.xlu1 %1279  ;;  %v1275_v28 = vpop.permute.xlu0 %1274  ;;  %v605_v32 = vsel %vm572_vm6, %v480_v42, %v520_v36  ;;  %v1711_v49 = vsel %vm572_vm6, %v481_v38, %v521_v37  ;;  %v365_v52 = vsel %vm362_vm9, %v1207_v31, %v1222_v40  ;;  %v329_v53 = vsel %vm326_vm8, %v1202_v27, %v1217_v18 }
  0xbc   : > { %v1276_v51 = vunpack.i.l.bf16 %v1275_v28  ;;  %v623_v47 = vpack.c.bf16 %v605_v32, %v596_v33  ;;  %v624_v50 = vpack.c.bf16 %v1711_v49, %v1690_v43  ;;  %v1281_v56 = vunpack.i.l.bf16 %v1280_v41 }
  0xbd   : > { %v1282_v62 = vunpack.i.h.bf16 %v1280_v41  ;;  %v1277_v20 = vunpack.i.h.bf16 %v1275_v28  ;;  %v1232_v31 = vunpack.i.h.bf16 %v1611_v61  ;;  %v584_v27 = vsel %vm572_vm6, %v329_v53, %v365_v52 }
  0xbe   : > { %769 = vmatprep.subr.bf16.mxu0 %v623_v47  ;;  %v294_v5 = vsel %vm290_vm7, %v1212_v10, %v1276_v51  ;;  %v330_v39 = vsel %vm326_vm8, %v1217_v18, %v1281_v56  ;;  %v611_v36 = vpack.c.bf16 %v584_v27, %v575_v19 }
  0xbf   : > { %v1726_v23 = vpop.permute.xlu1 %1289  ;;  %v1285_v3 = vpop.permute.xlu0 %1284  ;;  %770 = vmatpush1.bf16.msra.mxu0 %v622_v57  ;;  %v331_v21 = vsel %vm326_vm8, %v1281_v56, %v1282_v62  ;;  %v295_v22 = vsel %vm290_vm7, %v1276_v51, %v1277_v20  ;;  %v576_v1 = vsel %vm572_vm6, %v1419_v4, %v294_v5  ;;  %v560_v38 = vsel %vm553_vm0, %v1231_v2, %v1232_v31 }
  0xc0   : > { %v1291_v8 = vunpack.i.l.bf16 %v1726_v23  ;;  %v1287_v9 = vunpack.i.h.bf16 %v1285_v3  ;;  %v1286_v30 = vunpack.i.l.bf16 %v1285_v3  ;;  %v577_v4 = vsel %vm572_vm6, %v1449_v13, %v295_v22 }
  0xc1   : > { %v633_v33 = vpack.c.bf16 %v560_v38, %v560_v38  ;;  %v1292_v52 = vunpack.i.h.bf16 %v1726_v23 }
  0xc2   : > { %v296_v11 = vsel %vm290_vm7, %v1277_v20, %v1291_v8  ;;  %v366_v10 = vsel %vm362_vm9, %v1222_v40, %v1286_v30  ;;  %v367_v17 = vsel %vm362_vm9, %v1286_v30, %v1287_v9 }
  0xc3   : > { %v1742_v59 = vpop.permute.xlu1 %356  ;;  %v1744_v44 = vpop.permute.xlu0 %320  ;;  %v585_v18 = vsel %vm572_vm6, %v330_v39, %v366_v10  ;;  %v586_v34 = vsel %vm572_vm6, %v331_v21, %v367_v17  ;;  %v578_v37 = vsel %vm572_vm6, %v1459_v15, %v296_v11 }
  0xc4   : > { %v368_v25 = vsel %vm362_vm9, %v1287_v9, %v1742_v59  ;;  %v332_v40 = vsel %vm326_vm8, %v1282_v62, %v1744_v44  ;;  %v612_v7 = vpack.c.bf16 %v585_v18, %v576_v1  ;;  %v613_v32 = vpack.c.bf16 %v586_v34, %v577_v4 }
  0xc5   : > { %v587_v35 = vsel %vm572_vm6, %v332_v40, %v368_v25  ;;  %v667_v62 = vsel %vm647_vm4, %v633_v33, 0 }
  0xc6   : > { %730 = vmatprep.subr.bf16.mxu1 %v612_v7  ;;  %v614_v42 = vpack.c.bf16 %v587_v35, %v578_v37 }
  0xc7   : > { %v397_v41 = vpop.permute.xlu1 %396  ;;  %v1295_v28 = vpop.permute.xlu0 %1294  ;;  %731 = vmatpush1.bf16.msra.mxu1 %v611_v36 }
  0xc8   : > { %v1297_v46 = vunpack.i.h.bf16 %v1295_v28  ;;  %v1296_v51 = vunpack.i.l.bf16 %v1295_v28  ;;  %771 = vmatprep.subr.bf16.mxu0 %v614_v42  ;;  %v406_v53 = vsel %vm398_vm1, %v1257_v63, %v397_v41 }
  0xc9   : > { %772 = vmatpush1.bf16.msra.mxu0 %v613_v32 }
  0xca   : > { %v561_v15 = vsel %vm553_vm0, %v1232_v31, %v1296_v51  ;;  %1097 = vmatmul.mubr.msk.bf16.vlgmr.msra.gmra.mxu1 %vm643_vm10, %v1633_v6  ;;  %1111 = vmatprep.subr.bf16.mxu0 %v1347_v45  ;;  %v562_v13 = vsel %vm553_vm0, %v1296_v51, %v1297_v46 }
  0xcb   : > { %v634_v61 = vpack.c.bf16 %v561_v15, %v561_v15  ;;  %v1300_v2 = vpop.permute.xlu1 %1299  ;;  %v433_v47 = vpop.permute.xlu0 %432  ;;  %v635_v48 = vpack.c.bf16 %v562_v13, %v562_v13  ;;  %830 = vmatprep.mubr.bf16.mxu1 %v1346_v16 }
  0xcc   : > { %v442_v56 = vsel %vm434_vm2, %v1262_v58, %v433_v47  ;;  %1099 = vmatmul.mubr.msk.bf16.vlgmr.msra.gmra.mxu0 %vm643_vm10, %v1633_v6  ;;  %v1302_v55 = vunpack.i.h.bf16 %v1300_v2  ;;  %v1301_v20 = vunpack.i.l.bf16 %v1300_v2  ;;  %v297_v58 = vsel %vm290_vm7, %v1291_v8, %v1292_v52 }
  0xcd   : > { %v598_v57 = vsel %vm572_vm6, %v406_v53, %v442_v56  ;;  %1100 = vmatprep.subr.msk.bf16.mxu1 %vm647_vm4, %v634_v61  ;;  %v673_v16 = vsel %vm647_vm4, %v635_v48, 0  ;;  %1117 = vmatprep.mubr.msk.bf16.mxu0 %vm1348_vm11, %v1347_v45  ;;  %v599_v27 = vsel %vm572_vm6, %v397_v41, %v433_v47  ;;  %v579_v29 = vsel %vm572_vm6, %v1446_v12, %v297_v58 }
  0xce   : > { %809 = vmatpush1.bf16.msra.mxu1 %v667_v62  ;;  %1112 = vmatpush3.bf16.msra.mxu0 %v673_v16  ;;  %v482_v9 = vsel %vm474_vm5, %v1267_v60, %v1301_v20  ;;  %v483_v30 = vsel %vm474_vm5, %v1301_v20, %v1302_v55 }
  0xcf   : > { %v289_v54 = vpop.permute.xlu1 %288  ;;  %v1305_v63 = vpop.permute.xlu0 %1304  ;;  %1113 = vmatprep.subr.bf16.mxu0 %v1347_v45 }
  0xd0   : > { %v1307_v3 = vunpack.i.h.bf16 %v1305_v63  ;;  %v1306_v5 = vunpack.i.l.bf16 %v1305_v63  ;;  %v298_v24 = vsel %vm290_vm7, %v1292_v52, %v289_v54 }
  0xd1   : > { %v580_v35 = vsel %vm572_vm6, %v1453_v14, %v298_v24 }
  0xd2   : > { %v522_v31 = vsel %vm514_vm3, %v1272_v0, %v1306_v5  ;;  %v523_v19 = vsel %vm514_vm3, %v1306_v5, %v1307_v3  ;;  %v581_v0 = vsel %vm572_vm6, %v1495_v26, %v289_v54 }
  0xd3   : > { %v1315_v39 = vpop.permute.xlu1 %1314  ;;  %v1310_v23 = vpop.permute.xlu0 %1309  ;;  %v607_v8 = vsel %vm572_vm6, %v482_v9, %v522_v31  ;;  %v608_v11 = vsel %vm572_vm6, %v483_v30, %v523_v19 }
  0xd4   : > { %v1317_v60 = vunpack.i.h.bf16 %v1315_v39  ;;  %v1316_v10 = vunpack.i.l.bf16 %v1315_v39  ;;  %v1312_v17 = vunpack.i.h.bf16 %v1310_v23  ;;  %v1311_v21 = vunpack.i.l.bf16 %v1310_v23 }
  0xd5   : > { %v625_v22 = vpack.c.bf16 %v607_v8, %v598_v57  ;;  %v626_v1 = vpack.c.bf16 %v608_v11, %v599_v27 }
  0xd6   : > { %v369_v18 = vsel %vm362_vm9, %v1742_v59, %v1316_v10  ;;  %v370_v25 = vsel %vm362_vm9, %v1316_v10, %v1317_v60  ;;  %v590_v40 = vsel %vm572_vm6, %v1312_v17, %v1317_v60  ;;  %v333_v12 = vsel %vm326_vm8, %v1744_v44, %v1311_v21 }
  0xd7   : > { %v617_v7 = vpack.c.bf16 %v590_v40, %v581_v0  ;;  %v334_v34 = vsel %vm326_vm8, %v1311_v21, %v1312_v17  ;;  %810 = vmatprep.subr.bf16.mxu1 %v625_v22  ;;  %1114 = vmatpush3.bf16.msra.mxu0 %v626_v1  ;;  %v588_v26 = vsel %vm572_vm6, %v333_v12, %v369_v18 }
  0xd8   : > { %811 = vmatpush1.bf16.msra.mxu1 %v624_v50  ;;  %1115 = vmatprep.subr.bf16.mxu0 %v1347_v45  ;;  %v589_v59 = vsel %vm572_vm6, %v334_v34, %v370_v25  ;;  %v615_v36 = vpack.c.bf16 %v588_v26, %v579_v29 }
  0xd9   : > { %v616_v44 = vpack.c.bf16 %v589_v59, %v580_v35 }
  0xdb   : > { %812 = vmatprep.subr.bf16.mxu1 %v616_v44  ;;  %1116 = vmatpush3.bf16.msra.mxu0 %v617_v7 }
  0xdc   : > { %813 = vmatpush1.bf16.msra.mxu1 %v615_v36 }
  0xde   : > { %1118 = vmatmul.mubr.msk.bf16.vlgmr.msra.gmra.mxu0 %vm643_vm10, %v1633_v6 }
  0xdf   : > { %1101 = vmatmul.mubr.msk.bf16.vlgmr.msra.gmra.mxu1 %vm643_vm10, %v1633_v6 }
  0xe0   : > { %v641_v37 = vpop.permute.xlu0 %640 }
 0x16e   : > { %v709_v14 = vpop.f32.mrf.mxu0 }
 0x16f   : > { %v1818_v42 = vadd.f32 %v709_v14, %v641_v37 }
 0x170   : > { %v711_v43 = vpop.f32.mrf.mxu0 }
 0x171   : > { %v1820_v49 = vadd.f32 %v711_v43, %v641_v37 }
 0x172   : > { %v713_v50 = vpop.f32.mrf.mxu0 }
 0x173   : > { %v887_v4 = vcombine.low %v1818_v42, %v1820_v49 }
 0x174   : > { %v714_v6 = vpop.f32.mrf.mxu0 }
 0x175   : > { %895 = vst [vmem:[%s1825_s19] sm:$0xff] %v887_v4 }
 0x18a   : > { %v750_v38 = vpop.f32.mrf.mxu1 }
 0x18b   : > { %v1830_v41 = vadd.f32 %v750_v38, %v641_v37 }
 0x18c   : > { %v791_v28 = vpop.f32.mrf.mxu0  ;;  %v752_v32 = vpop.f32.mrf.mxu1 }
 0x18d   : > { %v1832_v46 = vadd.f32 %v791_v28, %v641_v37  ;;  %v1834_v51 = vadd.f32 %v752_v32, %v641_v37 }
 0x18e   : > { %v793_v33 = vpop.f32.mrf.mxu0  ;;  %v754_v15 = vpop.f32.mrf.mxu1 }
 0x18f   : > { %v888_v45 = vcombine.low %v1830_v41, %v1834_v51  ;;  %v1838_v13 = vadd.f32 %v793_v33, %v641_v37 }
 0x190   : > { %v795_v61 = vpop.f32.mrf.mxu0  ;;  %v755_v2 = vpop.f32.mrf.mxu1 }
 0x191   : > { %896 = vst [vmem:[%s1825_s19 + $0x8] sm:$0xff] %v888_v45  ;;  %v889_v47 = vcombine.low %v1832_v46, %v1838_v13 }
 0x192   : > { %v796_v48 = vpop.f32.mrf.mxu0 }
 0x193   : > { %897 = vst [vmem:[%s1825_s19 + $0x10] sm:$0xff] %v889_v47 }
 0x19e   : > { %v873_v52 = vpop.f32.mrf.mxu0 }
 0x19f   : > { %v1844_v53 = vadd.f32 %v873_v52, %v641_v37  ;;  %v832_v56 = vpop.f32.mrf.mxu1 }
 0x1a0   : > { %v1119_v57 = vpop.f32.mrf.mxu0  ;;  %v1849_v16 = vadd.f32 %v832_v56, %v641_v37 }
 0x1a1   : > { %900 = vst.msk [vmem:[%s1825_s19 + $0x20] sm:$0xf] %vm899_vm12, %v1844_v53  ;;  %v834_v62 = vpop.f32.mrf.mxu1 }
 0x1a2   : > { %v1851_v55 = vadd.f32 %v834_v62, %v641_v37  ;;  %v876_v20 = vpop.f32.mrf.mxu0  ;;  %904 = sbr.rel (%p1103_p4) target bundleno = 425 (0x1a9), region = 40 }
 0x1a3   : > { %v836_v54 = vpop.f32.mrf.mxu1 }
 0x1a4   : > { %v890_v63 = vcombine.low %v1849_v16, %v1851_v55  ;;  %v1120_v58 = vpop.f32.mrf.mxu0 }
 0x1a5   : > { %v837_v3 = vpop.f32.mrf.mxu1 }
 0x1a6   : > { %898 = vst [vmem:[%s1825_s19 + $0x18] sm:$0xff] %v890_v63 }
 0x1a7   : > { %vm905_vm13 = vcmask 3072   ;;  %v1349_v5 = vmov 0.0  }
 0x1a8   : > { %906 = vst.msk [vmem:[%s1925_s5] sm:$0xf] %vm905_vm13, %v1349_v5  ;;  %907 = vst.msk [vmem:[%s1926_s6] sm:$0xf] %vm905_vm13, %v1349_v5 }
 0x1a9 PF: > { %v912_v9 = vlaneseq  ;;  %v908_v31 = vld [vmem:[%s1923_s3] sm:$0xff]  ;;  %vm987_vm14 = vcmask 3072  }
 0x1ab   : > { %v913_v30 = vshrl.u32 %v912_v9, 7 }
 0x1ad   : > { %v914_v19 = vsub.s32 0, %v913_v30  ;;  %v918_v27 = vsub.s32 1, %v913_v30  ;;  %v922_v39 = vsub.s32 2, %v913_v30  ;;  %v926_v23 = vsub.s32 3, %v913_v30 }
 0x1ae   : > { %v930_v8 = vsub.s32 4, %v913_v30  ;;  %v934_v11 = vsub.s32 5, %v913_v30  ;;  %v938_v29 = vsub.s32 6, %v913_v30  ;;  %v942_v22 = vsub.s32 7, %v913_v30 }
 0x1af   : > { %v915_v60 = vrot.slane %v908_v31, %v914_v19  ;;  %v919_v10 = vrot.slane %v908_v31, %v918_v27  ;;  %v923_v17 = vrot.slane %v908_v31, %v922_v39  ;;  %v927_v21 = vrot.slane %v908_v31, %v926_v23 }
 0x1b0   : > { %v931_v24 = vrot.slane %v908_v31, %v930_v8  ;;  %v935_v0 = vrot.slane %v908_v31, %v934_v11  ;;  %v939_v12 = vrot.slane %v908_v31, %v938_v29  ;;  %v943_v59 = vrot.slane %v908_v31, %v942_v22  ;;  %v966_v29 = vld [vmem:[%s1925_s5] sm:$0xf] }
 0x1b1   : > { %v957_v1 = vmul.f32 %v915_v60, %v1818_v42  ;;  %v958_v18 = vmul.f32 %v919_v10, %v1820_v49  ;;  %v959_v25 = vmul.f32 %v923_v17, %v1830_v41  ;;  %v960_v40 = vmul.f32 %v927_v21, %v1834_v51  ;;  %v989_v10 = vld [vmem:[%s1926_s6] sm:$0xf] }
 0x1b2   : > { %v961_v7 = vmul.f32 %v931_v24, %v1832_v46  ;;  %v962_v36 = vmul.f32 %v935_v0, %v1838_v13  ;;  %v963_v4 = vmul.f32 %v939_v12, %v1849_v16  ;;  %v964_v61 = vmul.f32 %v943_v59, %v1851_v55 }
 0x1b3   : > { %v967_v34 = vsel %vm572_vm6, %v957_v1, 0.0  ;;  %v968_v26 = vsel %vm572_vm6, %v958_v18, 0.0  ;;  %v970_v35 = vsel %vm572_vm6, %v959_v25, 0.0  ;;  %v972_v37 = vsel %vm572_vm6, %v960_v40, 0.0 }
 0x1b4   : > { %v969_v44 = vadd.f32 %v968_v26, %v967_v34  ;;  %v990_v14 = vmul.f32 %v957_v1, %v1818_v42  ;;  %v991_v43 = vmul.f32 %v958_v18, %v1820_v49  ;;  %v992_v50 = vmul.f32 %v959_v25, %v1830_v41  ;;  %v1104_v42 = vld [vmem:[%s1923_s3 + $0x8] ss:$0 sm:$0xff] }
 0x1b5   : > { %v993_v38 = vmul.f32 %v960_v40, %v1834_v51  ;;  %v974_v28 = vsel %vm572_vm6, %v961_v7, 0.0  ;;  %v994_v32 = vmul.f32 %v961_v7, %v1832_v46  ;;  %v976_v51 = vsel %vm572_vm6, %v962_v36, 0.0 }
 0x1b6   : > { %v971_v6 = vadd.f32 %v970_v35, %v969_v44  ;;  %v999_v33 = vsel %vm572_vm6, %v990_v14, 0.0  ;;  %v1000_v15 = vsel %vm572_vm6, %v991_v43, 0.0  ;;  %v1002_v41 = vsel %vm572_vm6, %v992_v50, 0.0 }
 0x1b7   : > { %v1001_v45 = vadd.f32 %v1000_v15, %v999_v33  ;;  %v995_v2 = vmul.f32 %v962_v36, %v1838_v13  ;;  %v1004_v46 = vsel %vm572_vm6, %v993_v38, 0.0  ;;  %v965_v52 = vmul.f32 %v1104_v42, %v1844_v53 }
 0x1b8   : > { %v973_v49 = vadd.f32 %v972_v37, %v971_v6  ;;  %v978_v56 = vsel %vm572_vm6, %v963_v4, 0.0  ;;  %v996_v57 = vmul.f32 %v963_v4, %v1849_v16  ;;  %v1006_v62 = vsel %vm572_vm6, %v994_v32, 0.0 }
 0x1b9   : > { %v1003_v48 = vadd.f32 %v1002_v41, %v1001_v45  ;;  %v980_v63 = vsel %vm572_vm6, %v964_v61, 0.0  ;;  %v997_v58 = vmul.f32 %v964_v61, %v1851_v55  ;;  %v1008_v13 = vsel %vm572_vm6, %v995_v2, 0.0 }
 0x1ba   : > { %v975_v47 = vadd.f32 %v974_v28, %v973_v49  ;;  %v982_v9 = vsel %vm899_vm12, %v965_v52, 0.0  ;;  %v998_v30 = vmul.f32 %v965_v52, %v1844_v53  ;;  %v1010_v31 = vsel %vm572_vm6, %v996_v57, 0.0 }
 0x1bb   : > { %v1005_v54 = vadd.f32 %v1004_v46, %v1003_v48  ;;  %v1012_v27 = vsel %vm572_vm6, %v997_v58, 0.0 }
 0x1bc   : > { %v977_v20 = vadd.f32 %v976_v51, %v975_v47  ;;  %v1014_v8 = vsel %vm899_vm12, %v998_v30, 0.0 }
 0x1bd   : > { %v1007_v5 = vadd.f32 %v1006_v62, %v1005_v54 }
 0x1be   : > { %v979_v3 = vadd.f32 %v978_v56, %v977_v20 }
 0x1bf   : > { %v1009_v16 = vadd.f32 %v1008_v13, %v1007_v5 }
 0x1c0   : > { %v981_v19 = vadd.f32 %v980_v63, %v979_v3 }
 0x1c1   : > { %v1011_v23 = vadd.f32 %v1010_v31, %v1009_v16 }
 0x1c2   : > { %v983_v39 = vadd.f32 %v982_v9, %v981_v19 }
 0x1c3   : > { %v1013_v55 = vadd.f32 %v1012_v27, %v1011_v23 }
 0x1c4   : > { %984 = vadd.xlane.f32.xlu0 %v983_v39 }
 0x1c5   : > { %v1015_v11 = vadd.f32 %v1014_v8, %v1013_v55 }
 0x1c8   : > { %1016 = vadd.xlane.f32.xlu0 %v1015_v11 }
 0x24d   : > { %v985_v53 = vpop.xlane.xlu0 %984 }
 0x24e   : > { %v986_v60 = vadd.f32 %v985_v53, %v966_v29 }
 0x250   : > { %988 = vst.msk [vmem:[%s1925_s5] sm:$0xf] %vm987_vm14, %v986_v60 }
 0x251   : > { %v1017_v17 = vpop.xlane.xlu0 %1016 }
 0x252   : > { %v1018_v21 = vadd.f32 %v1017_v17, %v989_v10 }
 0x254   : > { %1019 = vst.msk [vmem:[%s1926_s6] sm:$0xf] %vm987_vm14, %v1018_v21 }
 0x255 PF: > { %s17_s21 = sadd.s32 1, %s1336_s21  }
 0x256   : > { %p14_p5 = scmp.ge.s32.totalorder %s17_s21, 4  }
 0x258   :  { %16 = sbr.rel (!%p14_p5) target bundleno = 1 (0x1), region = 86 }

</bundles_post_ra>
